<compile_context>
chip_gen: v7x
topology: tpu7x:2x2x1
jax: 0.10.0
libtpu: 0.0.40
codegen_flags: <defaults>
</compile_context>

<pallas_src>
import functools

import jax
import jax.numpy as jnp
from jax.experimental import pallas as pl
from jax.experimental.pallas import tpu as pltpu


# --------------------------- synthetic model config --------------------------
# (dim, kernel, stride) per conv layer of the HuBERT feature extractor.
CONV_FEATURE_LAYERS = [(32, 10, 5), (32, 8, 4), (32, 4, 2)]   # code_hop_size = 40
ENCODER_DIM = 32
N_UNITS = 64
MIN_CHUNK = 400
MAX_CHUNK = 100 * 16000

HOP = 1
for _d, _k, _s in CONV_FEATURE_LAYERS:
    HOP *= _s                                                  # 40 samples / frame

TILE_FRAMES = 512      # output frames per grid step (sweepable per generation)


def _round_up(v, m):
    return (v + m - 1) // m * m


def _cdiv(a, b):
    return -(-a // b)


def conv_out_len(t):
    for _dim, k, s in CONV_FEATURE_LAYERS:
        t = (t - k) // s + 1
    return t


# ------------------------------- parameters ----------------------------------

def init_params(key):
    params = {"conv": []}
    c_in = 1
    for (dim, kernel, stride) in CONV_FEATURE_LAYERS:
        key, kw, kb = jax.random.split(key, 3)
        w = jax.random.normal(kw, (kernel * c_in, dim), jnp.float32) / jnp.sqrt(
            jnp.float32(kernel * c_in))
        b = 0.02 * jax.random.normal(kb, (dim,), jnp.float32)
        params["conv"].append({"w": w, "b": b, "kernel": kernel, "stride": stride})
        c_in = dim
    key, kw = jax.random.split(key)
    params["proj_w"] = jax.random.normal(kw, (c_in, ENCODER_DIM), jnp.float32) / jnp.sqrt(
        jnp.float32(c_in))
    params["proj_b"] = jnp.zeros((ENCODER_DIM,), jnp.float32)
    params["ln_g"] = jnp.ones((ENCODER_DIM,), jnp.float32)     # final LayerNorm scale
    params["ln_b"] = jnp.zeros((ENCODER_DIM,), jnp.float32)    # final LayerNorm bias
    key, kw = jax.random.split(key)
    params["quant_w"] = jax.random.normal(kw, (ENCODER_DIM, N_UNITS), jnp.float32) / jnp.sqrt(
        jnp.float32(ENCODER_DIM))
    params["quant_b"] = jnp.zeros((N_UNITS,), jnp.float32)
    return params


def _pack_fused_params(params, dtype):
    """Fold each strided conv into a block-banded matmul over HOP-sample rows."""
    (d0, k0, s0), (d1, k1, s1), (d2, k2, s2) = CONV_FEATURE_LAYERS
    # "one final frame per HOP-sample row + one-row overhang" assumptions
    # (hold for the HuBERT conv stack / this config).
    assert HOP == s0 * s1 * s2
    assert k0 > s0 and k1 > s1 and k2 > s2
    assert k2 <= 2 * s2
    assert s1 * (s2 - 1) + k1 <= 2 * s1 * s2
    assert s0 * (s1 * s2 - 1) + k0 <= 2 * HOP

    f0 = HOP // s0            # layer-0 frames per row (8)
    f1 = f0 // s1             # layer-1 frames per row (2); 1 final frame per row

    w0 = params["conv"][0]["w"]                              # [k0, d0]
    w0band = jnp.zeros((HOP + k0 - s0, f0 * d0), jnp.float32)
    for j in range(f0):
        w0band = w0band.at[s0 * j:s0 * j + k0, d0 * j:d0 * (j + 1)].set(w0)
    w0a, w0b = w0band[:HOP], w0band[HOP:]
    b0 = jnp.tile(params["conv"][0]["b"], f0)[None, :]

    w1 = params["conv"][1]["w"]                              # [k1*d0, d1]
    w1band = jnp.zeros(((f0 + k1 - s1) * d0, f1 * d1), jnp.float32)
    for m in range(f1):
        w1band = w1band.at[s1 * m * d0:(s1 * m + k1) * d0, d1 * m:d1 * (m + 1)].set(w1)
    w1a, w1b = w1band[:f0 * d0], w1band[f0 * d0:]
    b1 = jnp.tile(params["conv"][1]["b"], f1)[None, :]

    w2 = params["conv"][2]["w"]                              # [k2*d1, d2]
    w2a, w2b = w2[:s2 * d1], w2[s2 * d1:]
    b2 = params["conv"][2]["b"][None, :]

    wp, bp = params["proj_w"], params["proj_b"][None, :]
    g, lb = params["ln_g"][None, :], params["ln_b"][None, :]
    wq, bq = params["quant_w"], params["quant_b"][None, :]

    arrs = (w0a, w0b, b0, w1a, w1b, b1, w2a, w2b, b2, wp, bp, g, lb, wq, bq)
    return tuple(a.astype(dtype) for a in arrs)


# ------------------------------- Pallas kernel --------------------------------

def _fused_hubert_kernel(xm_ref, xt_ref,
                         w0a_ref, w0b_ref, b0_ref,
                         w1a_ref, w1b_ref, b1_ref,
                         w2a_ref, w2b_ref, b2_ref,
                         wp_ref, bp_ref, g_ref, lb_ref, wq_ref, bq_ref,
                         out_ref, *, tile, n_ch, emit_tokens):
    f32 = jnp.float32

    def _mean_channels(ref):
        v = ref[...].astype(f32)             # [1, C, rows, HOP]
        acc = v[0, 0]
        for ch in range(1, n_ch):
            acc = acc + v[0, ch]
        return acc * (1.0 / n_ch)            # [rows, HOP]

    # ---- fused channel mean: raw audio is only ever read here ---------------
    # x rows are HOP(=40)-sample hops; row r of tile i == final frame i*tile+r.
    # 8 extra tail rows cover the conv stack's receptive-field overhang (65).
    x = jnp.concatenate([_mean_channels(xm_ref), _mean_channels(xt_ref)], axis=0)

    def _dot(a, w_ref):
        return jnp.dot(a, w_ref[...].astype(f32), preferred_element_type=f32)

    # ---- conv layer 0 (kernel 10, stride 5) as block-banded matmul ----------
    r1 = tile + 2
    ov0 = w0b_ref.shape[0]
    z1 = (_dot(x[0:r1, :], w0a_ref) + _dot(x[1:r1 + 1, 0:ov0], w0b_ref)
          + b0_ref[...].astype(f32))
    # TODO(synk): torch nn.GELU() is the exact erf form; tanh approximation is
    # used here to keep the Mosaic lowering guaranteed.
    h1 = jax.nn.gelu(z1, approximate=True)       # [tile+2, 8*32] frame-packed

    # ---- conv layer 1 (kernel 8, stride 4) -----------------------------------
    r2 = tile + 1
    ov1 = w1b_ref.shape[0]
    z2 = (_dot(h1[0:r2, :], w1a_ref) + _dot(h1[1:r2 + 1, 0:ov1], w1b_ref)
          + b1_ref[...].astype(f32))
    h2 = jax.nn.gelu(z2, approximate=True)       # [tile+1, 2*32] frame-packed

    # ---- conv layer 2 (kernel 4, stride 2) -----------------------------------
    ov2 = w2b_ref.shape[0]
    z3 = (_dot(h2[0:tile, :], w2a_ref) + _dot(h2[1:tile + 1, 0:ov2], w2b_ref)
          + b2_ref[...].astype(f32))
    h3 = jax.nn.gelu(z3, approximate=True)       # [tile, 32]

    # ---- post-extract projection (stand-in for the requested HuBERT layer) --
    # TODO(synk): the full HuBERT transformer encoder stack is not reproduced;
    # a single linear projection represents the `hubert_layer` output.
    f = _dot(h3, wp_ref) + bp_ref[...].astype(f32)           # [tile, 32]

    if not emit_tokens:
        out_ref[...] = f[None].astype(out_ref.dtype)
        return

    # ---- final LayerNorm + linear quantizer + argmax -------------------------
    mu = jnp.mean(f, axis=-1, keepdims=True)
    var = jnp.mean((f - mu) ** 2, axis=-1, keepdims=True)
    fn = (f - mu) * jax.lax.rsqrt(var + 1e-5)
    fn = fn * g_ref[...].astype(f32) + lb_ref[...].astype(f32)
    logits = _dot(fn, wq_ref) + bq_ref[...].astype(f32)      # [tile, n_units]
    mmax = jnp.max(logits, axis=-1, keepdims=True)
    idx = jax.lax.broadcasted_iota(jnp.int32, logits.shape, 1)
    tok = jnp.min(jnp.where(logits == mmax, idx, jnp.int32(2 ** 30)),
                  axis=-1, keepdims=True)                    # first max (torch-like)
    out_ref[...] = tok[None].astype(jnp.int32)


# ------------------------------ Pallas wrapper --------------------------------

def fused_tokenizer_chunk(params, x_chunk, dense=False, tile=TILE_FRAMES,
                          compute_dtype=jnp.float32):
    """Run the whole tokenizer on one [B, C, T] audio chunk with one pallas_call."""
    b, c, t = x_chunk.shape
    t_out = conv_out_len(t)
    tile = max(8, min(tile, _round_up(t_out, 8)))
    n_tiles = _cdiv(t_out, tile)

    rows_pad = n_tiles * tile + 8          # +8 rows: receptive-field tail block
    t_pad = rows_pad * HOP
    xp = x_chunk.astype(compute_dtype)
    if t_pad > t:
        xp = jnp.pad(xp, ((0, 0), (0, 0), (0, t_pad - t)))
    xr = xp.reshape(b, c, rows_pad, HOP)   # pure reshape: one frame-hop per row

    packed = _pack_fused_params(params, compute_dtype)

    tpb = tile // 8
    x_specs = [
        # main window: `tile` rows (= tile*HOP samples) per grid step
        pl.BlockSpec((1, c, tile, HOP), lambda bi, ti: (bi, 0, ti, 0)),
        # 8-row tail at the start of the *next* tile (overlap), same array
        pl.BlockSpec((1, c, 8, HOP),
                     lambda bi, ti, _t=tpb: (bi, 0, (ti + 1) * _t, 0)),
    ]
    w_specs = [pl.BlockSpec(w.shape, lambda bi, ti: (0, 0)) for w in packed]

    if dense:
        out_shape = jax.ShapeDtypeStruct((b, n_tiles * tile, ENCODER_DIM), jnp.float32)
        out_spec = pl.BlockSpec((1, tile, ENCODER_DIM), lambda bi, ti: (bi, ti, 0))
    else:
        out_shape = jax.ShapeDtypeStruct((b, n_tiles * tile, 1), jnp.int32)
        out_spec = pl.BlockSpec((1, tile, 1), lambda bi, ti: (bi, ti, 0))

    kernel = functools.partial(_fused_hubert_kernel, tile=tile, n_ch=c,
                               emit_tokens=not dense)
    out = pl.pallas_call(
        kernel,
        out_shape=out_shape,
        grid=(b, n_tiles),
        in_specs=x_specs + w_specs,
        out_specs=out_spec,
        compiler_params=pltpu.CompilerParams(
            dimension_semantics=("parallel", "parallel"),
            vmem_limit_bytes=32 * 1024 * 1024),
    )(xr, xr, *packed)

    if dense:
        return out[:, :t_out, :]
    return out[:, :t_out, 0]


# --------------------------------- forward ------------------------------------

def hubert_tokenizer_forward(params, x, dense=False, tile=TILE_FRAMES,
                             compute_dtype=jnp.float32):
    """x: [B, C, T] audio (the i_ndim == 3 path of the torch module)."""
    b, _c, t = x.shape
    # TODO(synk): should_normalize (per-item layer_norm over the raw waveform)
    # is off, matching task_cfg.normalize == False.
    outs = []
    for start in range(0, t, MAX_CHUNK):
        chunk = x[:, :, start:start + MAX_CHUNK]
        if chunk.shape[2] < MIN_CHUNK:
            continue
        outs.append(fused_tokenizer_chunk(params, chunk, dense=dense, tile=tile,
                                          compute_dtype=compute_dtype))
    out = jnp.concatenate(outs, axis=1)
    if dense:
        return out                          # [B, T_enc, ENCODER_DIM]
    return out.reshape(b, 1, -1)            # tokens.view(x.shape[0], 1, -1)


# --------------------------- plain-JAX reference -------------------------------

def _reference_dense(params, x):
    """XLA reference of the same synthetic model (for validating the fusion)."""
    xm = jnp.mean(x.astype(jnp.float32), axis=1)            # [B, T]
    h = xm[:, :, None]                                       # [B, T, 1]
    for layer in params["conv"]:
        k, s = layer["kernel"], layer["stride"]
        b_, t_, c_ = h.shape
        t_o = (t_ - k) // s + 1
        idx = jnp.arange(t_o)[:, None] * s + jnp.arange(k)[None, :]
        patches = h[:, idx, :].reshape(b_, t_o, k * c_)
        h = jax.nn.gelu(patches @ layer["w"] + layer["b"], approximate=True)
    return h @ params["proj_w"] + params["proj_b"]


def _reference_tokens(params, feats):
    f = feats.astype(jnp.float32)
    mu = jnp.mean(f, axis=-1, keepdims=True)
    var = jnp.mean((f - mu) ** 2, axis=-1, keepdims=True)
    fn = (f - mu) * jax.lax.rsqrt(var + 1e-5) * params["ln_g"] + params["ln_b"]
    logits = fn @ params["quant_w"] + params["quant_b"]
    return jnp.argmax(logits, axis=-1).astype(jnp.int32)


# ----------------------------------- main --------------------------------------

if __name__ == "__main__":
    key = jax.random.PRNGKey(0)
    kx, kp = jax.random.split(key)
    B, C, T = 2, 2, 800
    x = jax.random.normal(kx, (B, C, T), jnp.float32)
    params = init_params(kp)

    tokens = jax.block_until_ready(hubert_tokenizer_forward(params, x))
    t_out = conv_out_len(T)                 # 18 for T=800 (hop 5*4*2 = 40)
    assert tokens.shape == (B, 1, t_out), tokens.shape
    assert tokens.dtype == jnp.int32

    dense = jax.block_until_ready(hubert_tokenizer_forward(params, x, dense=True))
    assert dense.shape == (B, t_out, ENCODER_DIM), dense.shape

    # validate the fused / block-banded Pallas pipeline against the reference
    ref_dense = _reference_dense(params, x)
    max_err = float(jnp.max(jnp.abs(dense - ref_dense)))
    assert max_err < 1e-3, max_err

    ref_tok = _reference_tokens(params, ref_dense)
    match = float(jnp.mean((tokens[:, 0, :] == ref_tok).astype(jnp.float32)))
    assert match > 0.9, match               # allow rare argmax near-ties to differ

    print("KERNEL_OK")
</pallas_src>

<mosaic_0001>
module attributes {stable_mosaic.version = 11 : i64} {
  func.func @_fused_hubert_kernel(%arg0: i32, %arg1: i32, %arg2: memref<1x2x24x40xf32, #tpu.memory_space<vmem>>, %arg3: memref<1x2x8x40xf32, #tpu.memory_space<vmem>>, %arg4: memref<40x256xf32, #tpu.memory_space<vmem>>, %arg5: memref<5x256xf32, #tpu.memory_space<vmem>>, %arg6: memref<1x256xf32, #tpu.memory_space<vmem>>, %arg7: memref<256x64xf32, #tpu.memory_space<vmem>>, %arg8: memref<128x64xf32, #tpu.memory_space<vmem>>, %arg9: memref<1x64xf32, #tpu.memory_space<vmem>>, %arg10: memref<64x32xf32, #tpu.memory_space<vmem>>, %arg11: memref<64x32xf32, #tpu.memory_space<vmem>>, %arg12: memref<1x32xf32, #tpu.memory_space<vmem>>, %arg13: memref<32x32xf32, #tpu.memory_space<vmem>>, %arg14: memref<1x32xf32, #tpu.memory_space<vmem>>, %arg15: memref<1x32xf32, #tpu.memory_space<vmem>>, %arg16: memref<1x32xf32, #tpu.memory_space<vmem>>, %arg17: memref<32x64xf32, #tpu.memory_space<vmem>>, %arg18: memref<1x64xf32, #tpu.memory_space<vmem>>, %arg19: memref<1x24x1xi32, #tpu.memory_space<vmem>>) attributes {dimension_semantics = [#tpu.dimension_semantics<parallel>, #tpu.dimension_semantics<parallel>], iteration_bounds = array<i64: 2, 1>, scalar_prefetch = 0 : i64, scratch_operands = 0 : i64, tpu.core_type = #tpu.core_type<tc>, window_params = [{transform_indices = @transform_0, window_bounds = array<i64: 1, 2, 24, 40>}, {transform_indices = @transform_1, window_bounds = array<i64: 1, 2, 8, 40>}, {pipeline_mode = #tpu.pipeline_mode<synchronous>, transform_indices = @transform_2, window_bounds = array<i64: 40, 256>}, {pipeline_mode = #tpu.pipeline_mode<synchronous>, transform_indices = @transform_3, window_bounds = array<i64: 5, 256>}, {pipeline_mode = #tpu.pipeline_mode<synchronous>, transform_indices = @transform_4, window_bounds = array<i64: 1, 256>}, {pipeline_mode = #tpu.pipeline_mode<synchronous>, transform_indices = @transform_5, window_bounds = array<i64: 256, 64>}, {pipeline_mode = #tpu.pipeline_mode<synchronous>, transform_indices = @transform_6, window_bounds = array<i64: 128, 64>}, {pipeline_mode = #tpu.pipeline_mode<synchronous>, transform_indices = @transform_7, window_bounds = array<i64: 1, 64>}, {pipeline_mode = #tpu.pipeline_mode<synchronous>, transform_indices = @transform_8, window_bounds = array<i64: 64, 32>}, {pipeline_mode = #tpu.pipeline_mode<synchronous>, transform_indices = @transform_9, window_bounds = array<i64: 64, 32>}, {pipeline_mode = #tpu.pipeline_mode<synchronous>, transform_indices = @transform_10, window_bounds = array<i64: 1, 32>}, {pipeline_mode = #tpu.pipeline_mode<synchronous>, transform_indices = @transform_11, window_bounds = array<i64: 32, 32>}, {pipeline_mode = #tpu.pipeline_mode<synchronous>, transform_indices = @transform_12, window_bounds = array<i64: 1, 32>}, {pipeline_mode = #tpu.pipeline_mode<synchronous>, transform_indices = @transform_13, window_bounds = array<i64: 1, 32>}, {pipeline_mode = #tpu.pipeline_mode<synchronous>, transform_indices = @transform_14, window_bounds = array<i64: 1, 32>}, {pipeline_mode = #tpu.pipeline_mode<synchronous>, transform_indices = @transform_15, window_bounds = array<i64: 32, 64>}, {pipeline_mode = #tpu.pipeline_mode<synchronous>, transform_indices = @transform_16, window_bounds = array<i64: 1, 64>}, {transform_indices = @transform_17, window_bounds = array<i64: 1, 24, 1>}]} {
    %c0 = arith.constant 0 : index
    %c0_0 = arith.constant 0 : index
    %c0_1 = arith.constant 0 : index
    %c0_2 = arith.constant 0 : index
    %0 = vector.load %arg2[%c0, %c0_0, %c0_1, %c0_2] : memref<1x2x24x40xf32, #tpu.memory_space<vmem>>, vector<1x2x24x40xf32>
    %1 = vector.extract_strided_slice %0 {offsets = [0, 0, 0, 0], sizes = [1, 1, 24, 40], strides = [1, 1, 1, 1]} : vector<1x2x24x40xf32> to vector<1x1x24x40xf32>
    %2 = vector.shape_cast %1 : vector<1x1x24x40xf32> to vector<24x40xf32>
    %3 = vector.extract_strided_slice %0 {offsets = [0, 1, 0, 0], sizes = [1, 1, 24, 40], strides = [1, 1, 1, 1]} : vector<1x2x24x40xf32> to vector<1x1x24x40xf32>
    %4 = vector.shape_cast %3 : vector<1x1x24x40xf32> to vector<24x40xf32>
    %5 = arith.addf %2, %4 : vector<24x40xf32>
    %cst = arith.constant 5.000000e-01 : f32
    %6 = vector.broadcast %cst : f32 to vector<24x40xf32>
    %7 = arith.mulf %5, %6 : vector<24x40xf32>
    %c0_3 = arith.constant 0 : index
    %c0_4 = arith.constant 0 : index
    %c0_5 = arith.constant 0 : index
    %c0_6 = arith.constant 0 : index
    %8 = vector.load %arg3[%c0_3, %c0_4, %c0_5, %c0_6] : memref<1x2x8x40xf32, #tpu.memory_space<vmem>>, vector<1x2x8x40xf32>
    %9 = vector.extract_strided_slice %8 {offsets = [0, 0, 0, 0], sizes = [1, 1, 8, 40], strides = [1, 1, 1, 1]} : vector<1x2x8x40xf32> to vector<1x1x8x40xf32>
    %10 = vector.shape_cast %9 : vector<1x1x8x40xf32> to vector<8x40xf32>
    %11 = vector.extract_strided_slice %8 {offsets = [0, 1, 0, 0], sizes = [1, 1, 8, 40], strides = [1, 1, 1, 1]} : vector<1x2x8x40xf32> to vector<1x1x8x40xf32>
    %12 = vector.shape_cast %11 : vector<1x1x8x40xf32> to vector<8x40xf32>
    %13 = arith.addf %10, %12 : vector<8x40xf32>
    %cst_7 = arith.constant 5.000000e-01 : f32
    %14 = vector.broadcast %cst_7 : f32 to vector<8x40xf32>
    %15 = arith.mulf %13, %14 : vector<8x40xf32>
    %16 = tpu.concatenate %7, %15 in 0 : vector<24x40xf32>, vector<8x40xf32> -> vector<32x40xf32>
    %17 = vector.extract_strided_slice %16 {offsets = [0, 0], sizes = [26, 40], strides = [1, 1]} : vector<32x40xf32> to vector<26x40xf32>
    %c0_8 = arith.constant 0 : index
    %c0_9 = arith.constant 0 : index
    %18 = vector.load %arg4[%c0_8, %c0_9] : memref<40x256xf32, #tpu.memory_space<vmem>>, vector<40x256xf32>
    %cst_10 = arith.constant dense<0.000000e+00> : vector<26x256xf32>
    %19 = tpu.matmul %17, %18, %cst_10 {dimension_numbers = #tpu.dot_dimension_numbers<[1], [0], [0], [1], [0, 0, 1, 1], [], []>} : vector<26x40xf32>, vector<40x256xf32>, vector<26x256xf32> -> vector<26x256xf32>
    %20 = vector.extract_strided_slice %16 {offsets = [1, 0], sizes = [26, 5], strides = [1, 1]} : vector<32x40xf32> to vector<26x5xf32>
    %c0_11 = arith.constant 0 : index
    %c0_12 = arith.constant 0 : index
    %21 = vector.load %arg5[%c0_11, %c0_12] : memref<5x256xf32, #tpu.memory_space<vmem>>, vector<5x256xf32>
    %cst_13 = arith.constant dense<0.000000e+00> : vector<26x256xf32>
    %22 = tpu.matmul %20, %21, %cst_13 {dimension_numbers = #tpu.dot_dimension_numbers<[1], [0], [0], [1], [0, 0, 1, 1], [], []>} : vector<26x5xf32>, vector<5x256xf32>, vector<26x256xf32> -> vector<26x256xf32>
    %23 = arith.addf %19, %22 : vector<26x256xf32>
    %c0_14 = arith.constant 0 : index
    %c0_15 = arith.constant 0 : index
    %24 = vector.load %arg6[%c0_14, %c0_15] : memref<1x256xf32, #tpu.memory_space<vmem>>, vector<1x256xf32>
    %25 = vector.broadcast %24 : vector<1x256xf32> to vector<26x256xf32>
    %26 = arith.addf %23, %25 : vector<26x256xf32>
    %27 = arith.mulf %26, %26 : vector<26x256xf32>
    %28 = arith.mulf %26, %27 : vector<26x256xf32>
    %cst_16 = arith.constant 4.471500e-02 : f32
    %29 = vector.broadcast %cst_16 : f32 to vector<26x256xf32>
    %30 = arith.mulf %29, %28 : vector<26x256xf32>
    %31 = arith.addf %26, %30 : vector<26x256xf32>
    %cst_17 = arith.constant 0.797884583 : f32
    %32 = vector.broadcast %cst_17 : f32 to vector<26x256xf32>
    %33 = arith.mulf %32, %31 : vector<26x256xf32>
    %34 = math.tanh %33 : vector<26x256xf32>
    %cst_18 = arith.constant 1.000000e+00 : f32
    %35 = vector.broadcast %cst_18 : f32 to vector<26x256xf32>
    %36 = arith.addf %35, %34 : vector<26x256xf32>
    %cst_19 = arith.constant 5.000000e-01 : f32
    %37 = vector.broadcast %cst_19 : f32 to vector<26x256xf32>
    %38 = arith.mulf %37, %36 : vector<26x256xf32>
    %39 = arith.mulf %26, %38 : vector<26x256xf32>
    %40 = vector.extract_strided_slice %39 {offsets = [0, 0], sizes = [25, 256], strides = [1, 1]} : vector<26x256xf32> to vector<25x256xf32>
    %c0_20 = arith.constant 0 : index
    %c0_21 = arith.constant 0 : index
    %41 = vector.load %arg7[%c0_20, %c0_21] : memref<256x64xf32, #tpu.memory_space<vmem>>, vector<256x64xf32>
    %cst_22 = arith.constant dense<0.000000e+00> : vector<25x64xf32>
    %42 = tpu.matmul %40, %41, %cst_22 {dimension_numbers = #tpu.dot_dimension_numbers<[1], [0], [0], [1], [0, 0, 1, 1], [], []>} : vector<25x256xf32>, vector<256x64xf32>, vector<25x64xf32> -> vector<25x64xf32>
    %43 = vector.extract_strided_slice %39 {offsets = [1, 0], sizes = [25, 128], strides = [1, 1]} : vector<26x256xf32> to vector<25x128xf32>
    %c0_23 = arith.constant 0 : index
    %c0_24 = arith.constant 0 : index
    %44 = vector.load %arg8[%c0_23, %c0_24] : memref<128x64xf32, #tpu.memory_space<vmem>>, vector<128x64xf32>
    %cst_25 = arith.constant dense<0.000000e+00> : vector<25x64xf32>
    %45 = tpu.matmul %43, %44, %cst_25 {dimension_numbers = #tpu.dot_dimension_numbers<[1], [0], [0], [1], [0, 0, 1, 1], [], []>} : vector<25x128xf32>, vector<128x64xf32>, vector<25x64xf32> -> vector<25x64xf32>
    %46 = arith.addf %42, %45 : vector<25x64xf32>
    %c0_26 = arith.constant 0 : index
    %c0_27 = arith.constant 0 : index
    %47 = vector.load %arg9[%c0_26, %c0_27] : memref<1x64xf32, #tpu.memory_space<vmem>>, vector<1x64xf32>
    %48 = vector.broadcast %47 : vector<1x64xf32> to vector<25x64xf32>
    %49 = arith.addf %46, %48 : vector<25x64xf32>
    %50 = arith.mulf %49, %49 : vector<25x64xf32>
    %51 = arith.mulf %49, %50 : vector<25x64xf32>
    %cst_28 = arith.constant 4.471500e-02 : f32
    %52 = vector.broadcast %cst_28 : f32 to vector<25x64xf32>
    %53 = arith.mulf %52, %51 : vector<25x64xf32>
    %54 = arith.addf %49, %53 : vector<25x64xf32>
    %cst_29 = arith.constant 0.797884583 : f32
    %55 = vector.broadcast %cst_29 : f32 to vector<25x64xf32>
    %56 = arith.mulf %55, %54 : vector<25x64xf32>
    %57 = math.tanh %56 : vector<25x64xf32>
    %cst_30 = arith.constant 1.000000e+00 : f32
    %58 = vector.broadcast %cst_30 : f32 to vector<25x64xf32>
    %59 = arith.addf %58, %57 : vector<25x64xf32>
    %cst_31 = arith.constant 5.000000e-01 : f32
    %60 = vector.broadcast %cst_31 : f32 to vector<25x64xf32>
    %61 = arith.mulf %60, %59 : vector<25x64xf32>
    %62 = arith.mulf %49, %61 : vector<25x64xf32>
    %63 = vector.extract_strided_slice %62 {offsets = [0, 0], sizes = [24, 64], strides = [1, 1]} : vector<25x64xf32> to vector<24x64xf32>
    %c0_32 = arith.constant 0 : index
    %c0_33 = arith.constant 0 : index
    %64 = vector.load %arg10[%c0_32, %c0_33] : memref<64x32xf32, #tpu.memory_space<vmem>>, vector<64x32xf32>
    %cst_34 = arith.constant dense<0.000000e+00> : vector<24x32xf32>
    %65 = tpu.matmul %63, %64, %cst_34 {dimension_numbers = #tpu.dot_dimension_numbers<[1], [0], [0], [1], [0, 0, 1, 1], [], []>} : vector<24x64xf32>, vector<64x32xf32>, vector<24x32xf32> -> vector<24x32xf32>
    %66 = vector.extract_strided_slice %62 {offsets = [1, 0], sizes = [24, 64], strides = [1, 1]} : vector<25x64xf32> to vector<24x64xf32>
    %c0_35 = arith.constant 0 : index
    %c0_36 = arith.constant 0 : index
    %67 = vector.load %arg11[%c0_35, %c0_36] : memref<64x32xf32, #tpu.memory_space<vmem>>, vector<64x32xf32>
    %cst_37 = arith.constant dense<0.000000e+00> : vector<24x32xf32>
    %68 = tpu.matmul %66, %67, %cst_37 {dimension_numbers = #tpu.dot_dimension_numbers<[1], [0], [0], [1], [0, 0, 1, 1], [], []>} : vector<24x64xf32>, vector<64x32xf32>, vector<24x32xf32> -> vector<24x32xf32>
    %69 = arith.addf %65, %68 : vector<24x32xf32>
    %c0_38 = arith.constant 0 : index
    %c0_39 = arith.constant 0 : index
    %70 = vector.load %arg12[%c0_38, %c0_39] : memref<1x32xf32, #tpu.memory_space<vmem>>, vector<1x32xf32>
    %71 = vector.broadcast %70 : vector<1x32xf32> to vector<24x32xf32>
    %72 = arith.addf %69, %71 : vector<24x32xf32>
    %73 = arith.mulf %72, %72 : vector<24x32xf32>
    %74 = arith.mulf %72, %73 : vector<24x32xf32>
    %cst_40 = arith.constant 4.471500e-02 : f32
    %75 = vector.broadcast %cst_40 : f32 to vector<24x32xf32>
    %76 = arith.mulf %75, %74 : vector<24x32xf32>
    %77 = arith.addf %72, %76 : vector<24x32xf32>
    %cst_41 = arith.constant 0.797884583 : f32
    %78 = vector.broadcast %cst_41 : f32 to vector<24x32xf32>
    %79 = arith.mulf %78, %77 : vector<24x32xf32>
    %80 = math.tanh %79 : vector<24x32xf32>
    %cst_42 = arith.constant 1.000000e+00 : f32
    %81 = vector.broadcast %cst_42 : f32 to vector<24x32xf32>
    %82 = arith.addf %81, %80 : vector<24x32xf32>
    %cst_43 = arith.constant 5.000000e-01 : f32
    %83 = vector.broadcast %cst_43 : f32 to vector<24x32xf32>
    %84 = arith.mulf %83, %82 : vector<24x32xf32>
    %85 = arith.mulf %72, %84 : vector<24x32xf32>
    %c0_44 = arith.constant 0 : index
    %c0_45 = arith.constant 0 : index
    %86 = vector.load %arg13[%c0_44, %c0_45] : memref<32x32xf32, #tpu.memory_space<vmem>>, vector<32x32xf32>
    %cst_46 = arith.constant dense<0.000000e+00> : vector<24x32xf32>
    %87 = tpu.matmul %85, %86, %cst_46 {dimension_numbers = #tpu.dot_dimension_numbers<[1], [0], [0], [1], [0, 0, 1, 1], [], []>} : vector<24x32xf32>, vector<32x32xf32>, vector<24x32xf32> -> vector<24x32xf32>
    %c0_47 = arith.constant 0 : index
    %c0_48 = arith.constant 0 : index
    %88 = vector.load %arg14[%c0_47, %c0_48] : memref<1x32xf32, #tpu.memory_space<vmem>>, vector<1x32xf32>
    %89 = vector.broadcast %88 : vector<1x32xf32> to vector<24x32xf32>
    %90 = arith.addf %87, %89 : vector<24x32xf32>
    %cst_49 = arith.constant dense<0.000000e+00> : vector<24xf32>
    %91 = vector.multi_reduction <add>, %90, %cst_49 [1] : vector<24x32xf32> to vector<24xf32>
    %92 = vector.shape_cast %91 : vector<24xf32> to vector<24x1xf32>
    %cst_50 = arith.constant 3.200000e+01 : f32
    %93 = vector.broadcast %cst_50 : f32 to vector<24x1xf32>
    %94 = arith.divf %92, %93 : vector<24x1xf32>
    %95 = vector.broadcast %94 : vector<24x1xf32> to vector<24x32xf32>
    %96 = arith.subf %90, %95 : vector<24x32xf32>
    %97 = arith.mulf %96, %96 : vector<24x32xf32>
    %cst_51 = arith.constant dense<0.000000e+00> : vector<24xf32>
    %98 = vector.multi_reduction <add>, %97, %cst_51 [1] : vector<24x32xf32> to vector<24xf32>
    %99 = vector.shape_cast %98 : vector<24xf32> to vector<24x1xf32>
    %cst_52 = arith.constant 3.200000e+01 : f32
    %100 = vector.broadcast %cst_52 : f32 to vector<24x1xf32>
    %101 = arith.divf %99, %100 : vector<24x1xf32>
    %102 = vector.broadcast %94 : vector<24x1xf32> to vector<24x32xf32>
    %103 = arith.subf %90, %102 : vector<24x32xf32>
    %cst_53 = arith.constant 9.99999974E-6 : f32
    %104 = vector.broadcast %cst_53 : f32 to vector<24x1xf32>
    %105 = arith.addf %101, %104 : vector<24x1xf32>
    %106 = math.rsqrt %105 : vector<24x1xf32>
    %107 = vector.broadcast %106 : vector<24x1xf32> to vector<24x32xf32>
    %108 = arith.mulf %103, %107 : vector<24x32xf32>
    %c0_54 = arith.constant 0 : index
    %c0_55 = arith.constant 0 : index
    %109 = vector.load %arg15[%c0_54, %c0_55] : memref<1x32xf32, #tpu.memory_space<vmem>>, vector<1x32xf32>
    %110 = vector.broadcast %109 : vector<1x32xf32> to vector<24x32xf32>
    %111 = arith.mulf %108, %110 : vector<24x32xf32>
    %c0_56 = arith.constant 0 : index
    %c0_57 = arith.constant 0 : index
    %112 = vector.load %arg16[%c0_56, %c0_57] : memref<1x32xf32, #tpu.memory_space<vmem>>, vector<1x32xf32>
    %113 = vector.broadcast %112 : vector<1x32xf32> to vector<24x32xf32>
    %114 = arith.addf %111, %113 : vector<24x32xf32>
    %c0_58 = arith.constant 0 : index
    %c0_59 = arith.constant 0 : index
    %115 = vector.load %arg17[%c0_58, %c0_59] : memref<32x64xf32, #tpu.memory_space<vmem>>, vector<32x64xf32>
    %cst_60 = arith.constant dense<0.000000e+00> : vector<24x64xf32>
    %116 = tpu.matmul %114, %115, %cst_60 {dimension_numbers = #tpu.dot_dimension_numbers<[1], [0], [0], [1], [0, 0, 1, 1], [], []>} : vector<24x32xf32>, vector<32x64xf32>, vector<24x64xf32> -> vector<24x64xf32>
    %c0_61 = arith.constant 0 : index
    %c0_62 = arith.constant 0 : index
    %117 = vector.load %arg18[%c0_61, %c0_62] : memref<1x64xf32, #tpu.memory_space<vmem>>, vector<1x64xf32>
    %118 = vector.broadcast %117 : vector<1x64xf32> to vector<24x64xf32>
    %119 = arith.addf %116, %118 : vector<24x64xf32>
    %cst_63 = arith.constant dense<0xFF800000> : vector<24xf32>
    %120 = vector.multi_reduction <maximumf>, %119, %cst_63 [1] : vector<24x64xf32> to vector<24xf32>
    %121 = vector.shape_cast %120 : vector<24xf32> to vector<24x1xf32>
    %122 = tpu.iota {dimensions = array<i32: 1>} : vector<24x64xi32>
    %123 = vector.broadcast %121 : vector<24x1xf32> to vector<24x64xf32>
    %124 = arith.cmpf oeq, %119, %123 : vector<24x64xf32>
    %c1073741824_i32 = arith.constant 1073741824 : i32
    %125 = vector.broadcast %c1073741824_i32 : i32 to vector<24x64xi32>
    %126 = arith.select %124, %122, %125 : vector<24x64xi1>, vector<24x64xi32>
    %cst_64 = arith.constant dense<2147483647> : vector<24xi32>
    %127 = vector.multi_reduction <minsi>, %126, %cst_64 [1] : vector<24x64xi32> to vector<24xi32>
    %128 = vector.shape_cast %127 : vector<24xi32> to vector<24x1xi32>
    %129 = vector.shape_cast %128 : vector<24x1xi32> to vector<1x24x1xi32>
    %c0_65 = arith.constant 0 : index
    %c0_66 = arith.constant 0 : index
    %c0_67 = arith.constant 0 : index
    %130 = vector.load %arg19[%c0_65, %c0_66, %c0_67] : memref<1x24x1xi32, #tpu.memory_space<vmem>>, vector<1x24x1xi32>
    tpu.vector_store %arg19[%c0_65, %c0_66, %c0_67], %129 {strides = array<i32>} : memref<1x24x1xi32, #tpu.memory_space<vmem>>, vector<1x24x1xi32>,
    return
  }
  func.func @transform_0(%arg0: i32, %arg1: i32) -> (i32, i32, i32, i32) {
    %c0_i32 = arith.constant 0 : i32
    %c0_i32_0 = arith.constant 0 : i32
    %c0_i32_1 = arith.constant 0 : i32
    return %arg0, %c0_i32, %arg1, %c0_i32_0 : i32, i32, i32, i32
  }
  func.func @transform_1(%arg0: i32, %arg1: i32) -> (i32, i32, i32, i32) {
    %c1_i32 = arith.constant 1 : i32
    %0 = arith.addi %arg1, %c1_i32 : i32
    %c3_i32 = arith.constant 3 : i32
    %1 = arith.muli %0, %c3_i32 : i32
    %c0_i32 = arith.constant 0 : i32
    %c0_i32_0 = arith.constant 0 : i32
    %c0_i32_1 = arith.constant 0 : i32
    return %arg0, %c0_i32, %1, %c0_i32_0 : i32, i32, i32, i32
  }
  func.func @transform_2(%arg0: i32, %arg1: i32) -> (i32, i32) {
    %c0_i32 = arith.constant 0 : i32
    %c0_i32_0 = arith.constant 0 : i32
    %c0_i32_1 = arith.constant 0 : i32
    return %c0_i32, %c0_i32_0 : i32, i32
  }
  func.func @transform_3(%arg0: i32, %arg1: i32) -> (i32, i32) {
    %c0_i32 = arith.constant 0 : i32
    %c0_i32_0 = arith.constant 0 : i32
    %c0_i32_1 = arith.constant 0 : i32
    return %c0_i32, %c0_i32_0 : i32, i32
  }
  func.func @transform_4(%arg0: i32, %arg1: i32) -> (i32, i32) {
    %c0_i32 = arith.constant 0 : i32
    %c0_i32_0 = arith.constant 0 : i32
    %c0_i32_1 = arith.constant 0 : i32
    return %c0_i32, %c0_i32_0 : i32, i32
  }
  func.func @transform_5(%arg0: i32, %arg1: i32) -> (i32, i32) {
    %c0_i32 = arith.constant 0 : i32
    %c0_i32_0 = arith.constant 0 : i32
    %c0_i32_1 = arith.constant 0 : i32
    return %c0_i32, %c0_i32_0 : i32, i32
  }
  func.func @transform_6(%arg0: i32, %arg1: i32) -> (i32, i32) {
    %c0_i32 = arith.constant 0 : i32
    %c0_i32_0 = arith.constant 0 : i32
    %c0_i32_1 = arith.constant 0 : i32
    return %c0_i32, %c0_i32_0 : i32, i32
  }
  func.func @transform_7(%arg0: i32, %arg1: i32) -> (i32, i32) {
    %c0_i32 = arith.constant 0 : i32
    %c0_i32_0 = arith.constant 0 : i32
    %c0_i32_1 = arith.constant 0 : i32
    return %c0_i32, %c0_i32_0 : i32, i32
  }
  func.func @transform_8(%arg0: i32, %arg1: i32) -> (i32, i32) {
    %c0_i32 = arith.constant 0 : i32
    %c0_i32_0 = arith.constant 0 : i32
    %c0_i32_1 = arith.constant 0 : i32
    return %c0_i32, %c0_i32_0 : i32, i32
  }
  func.func @transform_9(%arg0: i32, %arg1: i32) -> (i32, i32) {
    %c0_i32 = arith.constant 0 : i32
    %c0_i32_0 = arith.constant 0 : i32
    %c0_i32_1 = arith.constant 0 : i32
    return %c0_i32, %c0_i32_0 : i32, i32
  }
  func.func @transform_10(%arg0: i32, %arg1: i32) -> (i32, i32) {
    %c0_i32 = arith.constant 0 : i32
    %c0_i32_0 = arith.constant 0 : i32
    %c0_i32_1 = arith.constant 0 : i32
    return %c0_i32, %c0_i32_0 : i32, i32
  }
  func.func @transform_11(%arg0: i32, %arg1: i32) -> (i32, i32) {
    %c0_i32 = arith.constant 0 : i32
    %c0_i32_0 = arith.constant 0 : i32
    %c0_i32_1 = arith.constant 0 : i32
    return %c0_i32, %c0_i32_0 : i32, i32
  }
  func.func @transform_12(%arg0: i32, %arg1: i32) -> (i32, i32) {
    %c0_i32 = arith.constant 0 : i32
    %c0_i32_0 = arith.constant 0 : i32
    %c0_i32_1 = arith.constant 0 : i32
    return %c0_i32, %c0_i32_0 : i32, i32
  }
  func.func @transform_13(%arg0: i32, %arg1: i32) -> (i32, i32) {
    %c0_i32 = arith.constant 0 : i32
    %c0_i32_0 = arith.constant 0 : i32
    %c0_i32_1 = arith.constant 0 : i32
    return %c0_i32, %c0_i32_0 : i32, i32
  }
  func.func @transform_14(%arg0: i32, %arg1: i32) -> (i32, i32) {
    %c0_i32 = arith.constant 0 : i32
    %c0_i32_0 = arith.constant 0 : i32
    %c0_i32_1 = arith.constant 0 : i32
    return %c0_i32, %c0_i32_0 : i32, i32
  }
  func.func @transform_15(%arg0: i32, %arg1: i32) -> (i32, i32) {
    %c0_i32 = arith.constant 0 : i32
    %c0_i32_0 = arith.constant 0 : i32
    %c0_i32_1 = arith.constant 0 : i32
    return %c0_i32, %c0_i32_0 : i32, i32
  }
  func.func @transform_16(%arg0: i32, %arg1: i32) -> (i32, i32) {
    %c0_i32 = arith.constant 0 : i32
    %c0_i32_0 = arith.constant 0 : i32
    %c0_i32_1 = arith.constant 0 : i32
    return %c0_i32, %c0_i32_0 : i32, i32
  }
  func.func @transform_17(%arg0: i32, %arg1: i32) -> (i32, i32, i32) {
    %c0_i32 = arith.constant 0 : i32
    %c0_i32_0 = arith.constant 0 : i32
    return %arg0, %arg1, %c0_i32 : i32, i32, i32
  }
}

</mosaic_0001>

<bundles_post_ra>
// kernel: tpu_custom_call.1
= control target key start
LH: loop header
LB: loop body
LE: loop exit
PB: predicated region body
PF: predicated region fallthrough
CT: control target
= control target key end

     0   :  { %s3279_s0 = inlined_call_operand.vmem [shape: f32[2,2,32,40], index: 0, kind: input, shape index: {}]   ;;  %s3280_s1 = inlined_call_operand.vmem [shape: f32[2,2,32,40], index: 1, kind: input, shape index: {}]   ;;  %s3281_s2 = inlined_call_operand.vmem [shape: f32[40,256], index: 2, kind: input, shape index: {}]   ;;  %s3282_s3 = inlined_call_operand.vmem [shape: f32[5,256], index: 3, kind: input, shape index: {}]   ;;  %s3283_s4 = inlined_call_operand.vmem [shape: f32[1,256], index: 4, kind: input, shape index: {}]   ;;  %s3284_s5 = inlined_call_operand.vmem [shape: f32[256,64], index: 5, kind: input, shape index: {}]   ;;  %s3285_s6 = inlined_call_operand.vmem [shape: f32[128,64], index: 6, kind: input, shape index: {}]   ;;  %s3286_s7 = inlined_call_operand.vmem [shape: f32[1,64], index: 7, kind: input, shape index: {}]   ;;  %s3287_s8 = inlined_call_operand.vmem [shape: f32[64,32], index: 8, kind: input, shape index: {}]   ;;  %s3288_s9 = inlined_call_operand.vmem [shape: f32[64,32], index: 9, kind: input, shape index: {}]   ;;  %s3289_s10 = inlined_call_operand.vmem [shape: f32[1,32], index: 10, kind: input, shape index: {}]   ;;  %s3290_s11 = inlined_call_operand.vmem [shape: f32[32,32], index: 11, kind: input, shape index: {}]   ;;  %s3291_s12 = inlined_call_operand.vmem [shape: f32[1,32], index: 12, kind: input, shape index: {}]   ;;  %s3292_s13 = inlined_call_operand.vmem [shape: f32[1,32], index: 13, kind: input, shape index: {}]   ;;  %s3293_s14 = inlined_call_operand.vmem [shape: f32[1,32], index: 14, kind: input, shape index: {}]   ;;  %s3294_s15 = inlined_call_operand.vmem [shape: f32[32,64], index: 15, kind: input, shape index: {}]   ;;  %s3295_s16 = inlined_call_operand.vmem [shape: f32[1,64], index: 16, kind: input, shape index: {}]   ;;  %s3296_s17 = inlined_call_operand.vmem [shape: s32[2,24,1], index: 17, kind: output, shape index: {}]  }
   0x1   :  { %3299 = sst [smem:[#allocation6_spill]] %s3279_s0 }
   0x2   :  { %3300 = sst [smem:[#allocation7_spill]] %s3280_s1 }
   0x3   :  { %3301 = sst [smem:[#allocation8_spill]] %s3295_s16 }
   0x4   :  { %3302 = sst [smem:[#allocation9_spill]] %s3296_s17 }
   0x5   :  { %s2786_s24 = smov 0   ;;  %s2788_s25 = smov 0  }
   0x6   :  { %s2790_s26 = smov 0   ;;  %s2792_s27 = smov 0  }
   0x7   :  { %s2794_s28 = smov 0  }
   0x8 LB: > { %3303 = sst [smem:[#allocation4_spill]] %s2679_s26  ;;  %s39_s29 = sadd.s32 1, %s2683_s27  ;;  %s2687_s28 = sphi %s2794_s28, %s27_s28   ;;  %s2683_s27 = sphi %s2792_s27, %s3315_s27   ;;  %s2679_s26 = sphi %s2790_s26, %s3314_s26   ;;  %s2675_s25 = sphi %s2788_s25, %s3313_s25   ;;  %s2671_s24 = sphi %s2786_s24, %s3312_s24  }
   0x9   : > { %p41_p0 = scmp.ge.s32.totalorder %s39_s29, 2  ;;  %p55_p1 = scmp.ne.s32.totalorder %s2675_s25, %s2671_s24 }
   0xa   : > { %p56_p2 = scmp.eq.s32.totalorder %s2687_s28, 0  ;;  %s48_s18 = sadd.s32 1, %s2675_s25 }
   0xb   : > { %s3317_s29 = smov (%p41_p0, %s39_s29), 0  ;;  %p2128_p5 = scmp.ge.s32.totalorder %s2687_s28, 2 }
   0xc   : > { %3304 = sst [smem:[#allocation5_spill]] %s3317_s29  ;;  %p2817_p3 = por %p56_p2, %p55_p1 }
   0xd   : > { %s43_s30 = ssub.s32 %s2683_s27, %s3317_s29  ;;  %501 = sbr.rel (%p2128_p5) target bundleno = 51 (0x33), region = 76 }
   0xe   : > { %p46_p4 = scmp.eq.s32.totalorder %s43_s30, 0 }
  0x10   : > { %s2825_s19 = scalar_select %p46_p4, %s2675_s25, %s48_s18  }
  0x14   : > { %504 = sbr.rel (!%p2817_p3) target bundleno = 39 (0x27), region = 80  ;;  %s506_s1 = sand.u32 (%p2817_p3), 1, %s2675_s25  }
  0x15   : > { %s2175_s20 = sshll.u32 (%p2817_p3), %s2683_s27, 6  ;;  %s2519_s21 = smul.u32 (%p2817_p3), 48, %s506_s1 }
  0x16   : > { %s3306_s17 = sld [smem:[#allocation6_spill]] (%p2817_p3)  ;;  %s2689_s16 = smov (%p2817_p3), 0  }
  0x17   : > { %s508_s29 = scalar_lea.vmem (%p2817_p3), [#allocation2], %s2519_s21  }
  0x1c   : > { %s518_s26 = scalar_lea.vmem %s3306_s17, %s2175_s20  }
  0x1d LB: >> { %v597_v0 = vld [vmem:[%s518_s26] sm:$0xff]  ;;  %v599_v1 = vld [vmem:[%s518_s26 + $0x8] sm:$0xff]  ;;  %v601_v2 = vld [vmem:[%s518_s26 + $0x10] sm:$0xff]  ;;  %s591_s16 = sadd.s32 1, %s2691_s16   ;;  %s2691_s16 = sphi %s2689_s16, %s591_s16  }
  0x1e   : >> { %598 = vst [vmem:[%s508_s29] sm:$0xff] %v597_v0  ;;  %600 = vst [vmem:[%s508_s29 + $0x8] sm:$0xff] %v599_v1  ;;  %v603_v3 = vld [vmem:[%s518_s26 + $0x20] sm:$0xff]  ;;  %v605_v4 = vld [vmem:[%s518_s26 + $0x28] sm:$0xff]  ;;  %p590_p6 = scmp.ge.s32.totalorder %s591_s16, 1 }
  0x1f   : >> { %602 = vst [vmem:[%s508_s29 + $0x10] sm:$0xff] %v601_v2  ;;  %v607_v5 = vld [vmem:[%s518_s26 + $0x30] sm:$0xff]  ;;  %604 = vst [vmem:[%s508_s29 + $0x18] sm:$0xff] %v603_v3 }
  0x20   : >> { %606 = vst [vmem:[%s508_s29 + $0x20] sm:$0xff] %v605_v4  ;;  %608 = vst [vmem:[%s508_s29 + $0x28] sm:$0xff] %v607_v5  ;;  %593 = sbr.rel (!%p590_p6) target bundleno = 29 (0x1d), region = 229 }
  0x27 PF: > { %648 = sbr.rel (!%p2817_p3) target bundleno = 51 (0x33), region = 132  ;;  %s650_s17 = sand.u32 (%p2817_p3), 1, %s2675_s25  }
  0x28   : > { %s2176_s30 = sshll.u32 (%p2817_p3), %s2683_s27, 6  ;;  %s2137_s18 = sshll.u32 (%p2817_p3), %s650_s17, 4 }
  0x29   : > { %s3307_s21 = sld [smem:[#allocation7_spill]] (%p2817_p3)  ;;  %s652_s23 = scalar_lea.vmem (%p2817_p3), [#allocation3], %s2137_s18 }
  0x2f   : > { %s2032_s22 = scalar_lea.vmem %s3307_s21, %s2176_s30 }
  0x30   : > { %v2140_v6 = vld [vmem:[%s2032_s22 + $0x18] sm:$0xff] }
  0x31   : > { %v2141_v7 = vld [vmem:[%s2032_s22 + $0x38] sm:$0xff]  ;;  %689 = vst [vmem:[%s652_s23] sm:$0xff] %v2140_v6 }
  0x32   : > { %691 = vst [vmem:[%s652_s23 + $0x8] sm:$0xff] %v2141_v7 }
  0x33 PF: > { %p2142_p7 = scmp.ge.s32.totalorder %s2687_s28, 1  ;;  %p696_p8 = scmp.lt.s32.totalorder %s2687_s28, 3 }
  0x35   : > { %p697_p9 = pnand %p2142_p7, %p696_p8 }
  0x36   : > { %v813_v8 = vld [vmem:[%s3282_s3 + $0x8] sm:$0x1f] (!%p697_p9)  ;;  %vm835_vm0 = vcmask (!%p697_p9), 1044480   ;;  %v812_v9 = vld [vmem:[%s3282_s3] sm:$0x1f] (!%p697_p9)  ;;  %v2693_v10 = vmov (!%p697_p9), 0.0  }
  0x37   : > { %700 = sbr.rel (%p697_p9) target bundleno = 2036 (0x7f4), region = 170  ;;  %2145 = vmatprep.subr.msk.mxu0 (!%p697_p9), %vm835_vm0, %v813_v8  ;;  %906 = vmatprep.mubr.f32.mxu0 (!%p697_p9), %v2693_v10  ;;  %v803_v11 = vld [vmem:[%s3281_s2 + $0x8] sm:$0xff] (!%p697_p9)  ;;  %v805_v12 = vld [vmem:[%s3281_s2 + $0x18] sm:$0xff] (!%p697_p9)  ;;  %s703_s20 = sand.u32 (!%p697_p9), 1, %s2671_s24   ;;  %v802_v27 = vld [vmem:[%s3281_s2] sm:$0xff] (!%p697_p9)  ;;  %vm818_vm1 = vcmask (!%p697_p9), 1046528  }
  0x38   : > { %2146 = vmatpush1.msk.msra.mxu0 (!%p697_p9), %vm835_vm0, %v812_v9  ;;  %v2399_v13 = vpack.c.bf16 (!%p697_p9), %v805_v12, %v803_v11  ;;  %s2520_s21 = smul.u32 (!%p697_p9), 48, %s703_s20  ;;  %s2143_s22 = sshll.u32 (!%p697_p9), %s703_s20, 4  ;;  %v804_v28 = vld [vmem:[%s3281_s2 + $0x10] sm:$0xff] (!%p697_p9)  ;;  %v807_v31 = vld [vmem:[%s3281_s2 + $0x28] sm:$0xff] (!%p697_p9)  ;;  %v809_v32 = vld [vmem:[%s3281_s2 + $0x38] sm:$0xff] (!%p697_p9)  ;;  %vm826_vm2 = vcmask (!%p697_p9), 39936  }
  0x39   : > { %s712_s23 = scalar_lea.vmem (!%p697_p9), [#allocation3], %s2143_s22  ;;  %v2401_v35 = vpack.c.bf16 (!%p697_p9), %v804_v28, %v802_v27  ;;  %v2403_v38 = vpack.c.bf16 (!%p697_p9), %v809_v32, %v807_v31  ;;  %v806_v39 = vld [vmem:[%s3281_s2 + $0x20] sm:$0xff] (!%p697_p9)  ;;  %v808_v40 = vld [vmem:[%s3281_s2 + $0x30] sm:$0xff] (!%p697_p9)  ;;  %v811_v45 = vld [vmem:[%s3281_s2 + $0x48] sm:$0xff] (!%p697_p9)  ;;  %vm931_vm3 = vcmask (!%p697_p9), 326656   ;;  %vm2695_vm4 = vmmov (!%p697_p9), 0  }
  0x3a   : > { %2400 = vmatprep.subr.bf16.mxu0 (!%p697_p9), %v2399_v13  ;;  %v798_v14 = vld [vmem:[%s712_s23] sm:$0xff] (!%p697_p9)  ;;  %v799_v15 = vld [vmem:[%s712_s23 + $0x8] sm:$0xff] (!%p697_p9)  ;;  %s705_s16 = scalar_lea.vmem (!%p697_p9), [#allocation2], %s2520_s21  ;;  %v2405_v43 = vpack.c.bf16 (!%p697_p9), %v808_v40, %v806_v39  ;;  %vm1428_vm5 = vcmask (!%p697_p9), 523264   ;;  %vm1649_vm6 = vcmask (!%p697_p9), 261120   ;;  %s3308_s30 = sld [smem:[#allocation8_spill]] (!%p697_p9) }
  0x3b   : > { %v786_v16 = vld [vmem:[%s705_s16] sm:$0xff] (!%p697_p9)  ;;  %v787_v17 = vld [vmem:[%s705_s16 + $0x8] sm:$0xff] (!%p697_p9)  ;;  %v789_v18 = vld [vmem:[%s705_s16 + $0x18] sm:$0xff] (!%p697_p9)  ;;  %v800_v25 = vadd.f32 (!%p697_p9), %v799_v15, %v798_v14  ;;  %s3309_s18 = sld [smem:[#allocation4_spill]] (!%p697_p9)  ;;  %s3310_s22 = sld [smem:[#allocation9_spill]] (!%p697_p9)  ;;  %vm1961_vm13 = vcmask (!%p697_p9), 7168  }
  0x3c   : > { %v790_v19 = vld [vmem:[%s705_s16 + $0x20] sm:$0xff] (!%p697_p9)  ;;  %v792_v20 = vadd.f32 (!%p697_p9), %v789_v18, %v786_v16  ;;  %v788_v21 = vld [vmem:[%s705_s16 + $0x10] sm:$0xff] (!%p697_p9)  ;;  %v791_v22 = vld [vmem:[%s705_s16 + $0x28] sm:$0xff] (!%p697_p9) }
  0x3d   : > { %v793_v23 = vadd.f32 (!%p697_p9), %v790_v19, %v787_v17  ;;  %v794_v24 = vadd.f32 (!%p697_p9), %v791_v22, %v788_v21  ;;  %v801_v37 = vmul.f32 (!%p697_p9), 0.5, %v800_v25  ;;  %v810_v47 = vld [vmem:[%s3281_s2 + $0x40] sm:$0xff] (!%p697_p9)  ;;  %v1138_v49 = vld [vmem:[%s3284_s5 + $0x88] sm:$0xff] (!%p697_p9)  ;;  %v1139_v54 = vld [vmem:[%s3284_s5 + $0x90] sm:$0xff] (!%p697_p9) }
  0x3e   : > { %v795_v26 = vmul.f32 0.5, %v792_v20  ;;  %v1137_v48 = vld [vmem:[%s3284_s5 + $0x80] sm:$0xff]  ;;  %v1122_v52 = vld [vmem:[%s3284_s5 + $0x8] sm:$0xff]  ;;  %v1140_v55 = vld [vmem:[%s3284_s5 + $0x98] sm:$0xff] }
  0x3f   : > { %v796_v29 = vmul.f32 0.5, %v793_v23  ;;  %v797_v30 = vmul.f32 0.5, %v794_v24  ;;  %v824_v44 = vrot.slane %v801_v37, 1  ;;  %v2439_v50 = vpack.c.bf16 %v1138_v49, %v1137_v48  ;;  %v1121_v51 = vld [vmem:[%s3284_s5] sm:$0xff]  ;;  %v1123_v57 = vld [vmem:[%s3284_s5 + $0x10] sm:$0xff]  ;;  %v1124_v58 = vld [vmem:[%s3284_s5 + $0x18] sm:$0xff] }
  0x40   : > { %v819_v33 = vrot.slane %v795_v26, 1  ;;  %v2441_v53 = vpack.c.bf16 %v1122_v52, %v1121_v51  ;;  %v2443_v56 = vpack.c.bf16 %v1140_v55, %v1139_v54  ;;  %v2445_v59 = vpack.c.bf16 %v1124_v58, %v1123_v57  ;;  %v1141_v60 = vld [vmem:[%s3284_s5 + $0xa0] sm:$0xff]  ;;  %v1142_v61 = vld [vmem:[%s3284_s5 + $0xa8] sm:$0xff]  ;;  %v1143_v5 = vld [vmem:[%s3284_s5 + $0xb0] sm:$0xff] }
  0x41   : > { %v820_v34 = vrot.slane %v796_v29, 1  ;;  %v822_v36 = vrot.slane %v797_v30, 1  ;;  %v2447_v62 = vpack.c.bf16 %v1142_v61, %v1141_v60  ;;  %v1153_v63 = vld [vmem:[%s3285_s6] sm:$0xff]  ;;  %v1154_v0 = vld [vmem:[%s3285_s6 + $0x8] sm:$0xff]  ;;  %v1144_v6 = vld [vmem:[%s3284_s5 + $0xb8] sm:$0xff]  ;;  %v1031_v57 = vlaneseq  ;;  %p777_p10 = scmp.lt.s32.totalorder %s3309_s18, 1 }
  0x42   : > { %v1125_v1 = vld [vmem:[%s3284_s5 + $0x20] sm:$0xff]  ;;  %v2407_v2 = vpack.c.bf16 %v1154_v0, %v1153_v63  ;;  %v1126_v3 = vld [vmem:[%s3284_s5 + $0x28] sm:$0xff]  ;;  %v2451_v7 = vpack.c.bf16 %v1144_v6, %v1143_v5  ;;  %v1155_v8 = vld [vmem:[%s3285_s6 + $0x10] sm:$0xff] }
  0x43   : > { %v821_v41 = vsel %vm818_vm1, %v819_v33, %v820_v34  ;;  %v823_v42 = vsel %vm818_vm1, %v820_v34, %v822_v36  ;;  %v825_v46 = vsel %vm818_vm1, %v822_v36, %v824_v44  ;;  %v2449_v4 = vpack.c.bf16 %v1126_v3, %v1125_v1  ;;  %v1156_v9 = vld [vmem:[%s3285_s6 + $0x18] sm:$0xff]  ;;  %v1127_v11 = vld [vmem:[%s3284_s5 + $0x30] sm:$0xff]  ;;  %v1145_v15 = vld [vmem:[%s3284_s5 + $0xc0] sm:$0xff]  ;;  %s3319_s18 = smov (!%p777_p10, %s3309_s18), 1 }
  0x44   : > { %2147 = vmatmul.mubr.msk.f32.vlgmr.msra.gmra.mrb[0].mxu0 %vm826_vm2, %v821_v41  ;;  %2408 = vmatprep.subr.bf16.mxu1 %v2407_v2  ;;  %v2411_v12 = vpack.c.bf16 %v1156_v9, %v1155_v8  ;;  %v1128_v13 = vld [vmem:[%s3284_s5 + $0x38] sm:$0xff]  ;;  %v1146_v16 = vld [vmem:[%s3284_s5 + $0xc8] sm:$0xff]  ;;  %v1157_v18 = vld [vmem:[%s3285_s6 + $0x20] sm:$0xff]  ;;  %v1032_v58 = vshrl.u32 %v1031_v57, 7  ;;  %s2521_s1 = smul.u32 24, %s3319_s18 }
  0x45   : > { %2402 = vmatpush1.bf16.msra.mxu0 %v2401_v35  ;;  %912 = vmatprep.mubr.f32.mxu0 %v2693_v10  ;;  %v2453_v14 = vpack.c.bf16 %v1128_v13, %v1127_v11  ;;  %v2455_v17 = vpack.c.bf16 %v1146_v16, %v1145_v15  ;;  %v1158_v19 = vld [vmem:[%s3285_s6 + $0x28] sm:$0xff]  ;;  %v1129_v20 = vld [vmem:[%s3284_s5 + $0x40] sm:$0xff]  ;;  %v1147_v24 = vld [vmem:[%s3284_s5 + $0xd0] sm:$0xff] }
  0x46   : > { %2404 = vmatprep.subr.bf16.mxu0 %v2403_v38  ;;  %2410 = vmatpush3.bf16.msra.mxu1 %v2407_v2  ;;  %v2415_v21 = vpack.c.bf16 %v1158_v19, %v1157_v18  ;;  %v1130_v22 = vld [vmem:[%s3284_s5 + $0x48] sm:$0xff]  ;;  %v1148_v25 = vld [vmem:[%s3284_s5 + $0xd8] sm:$0xff]  ;;  %v1159_v27 = vld [vmem:[%s3285_s6 + $0x30] sm:$0xff]  ;;  %v1037_v61 = vsub.s32 1, %v1032_v58  ;;  %s784_s23 = scalar_lea.vmem %s3310_s22, %s2521_s1 }
  0x47   : > { %2412 = vmatprep.subr.bf16.mxu1 %v2411_v12  ;;  %v2457_v23 = vpack.c.bf16 %v1130_v22, %v1129_v20  ;;  %v1160_v28 = vld [vmem:[%s3285_s6 + $0x38] sm:$0xff]  ;;  %v1149_v33 = vld [vmem:[%s3284_s5 + $0xe0] sm:$0xff]  ;;  %v1150_v34 = vld [vmem:[%s3284_s5 + $0xe8] sm:$0xff] }
  0x48   : > { %2148 = vmatmul.mubr.msk.f32.gmra.mrb[2].mxu0 %vm826_vm2, %v823_v42  ;;  %v1132_v31 = vld [vmem:[%s3284_s5 + $0x58] sm:$0xff]  ;;  %v2463_v35 = vpack.c.bf16 %v1150_v34, %v1149_v33  ;;  %v1161_v36 = vld [vmem:[%s3285_s6 + $0x40] sm:$0xff]  ;;  %v1134_v40 = vld [vmem:[%s3284_s5 + $0x68] sm:$0xff] }
  0x49   : > { %2406 = vmatpush1.bf16.msra.mxu0 %v2405_v43  ;;  %918 = vmatprep.mubr.f32.mxu0 %v2693_v10  ;;  %v1133_v38 = vld [vmem:[%s3284_s5 + $0x60] sm:$0xff]  ;;  %v1151_v42 = vld [vmem:[%s3284_s5 + $0xf0] sm:$0xff]  ;;  %v1152_v43 = vld [vmem:[%s3284_s5 + $0xf8] sm:$0xff] }
  0x4a   : > { %948 = vmatprep.subr.mxu0 %v811_v45  ;;  %2414 = vmatpush3.bf16.msra.mxu1 %v2411_v12  ;;  %v2465_v41 = vpack.c.bf16 %v1134_v40, %v1133_v38  ;;  %v1163_v45 = vld [vmem:[%s3285_s6 + $0x50] sm:$0xff]  ;;  %v1136_v49 = vld [vmem:[%s3284_s5 + $0x78] sm:$0xff]  ;;  %v1165_v51 = vld [vmem:[%s3285_s6 + $0x60] sm:$0xff] }
  0x4b   : > { %2416 = vmatprep.subr.bf16.mxu1 %v2415_v21  ;;  %v1166_v52 = vld [vmem:[%s3285_s6 + $0x68] sm:$0xff]  ;;  %v1167_v54 = vld [vmem:[%s3285_s6 + $0x70] sm:$0xff]  ;;  %v1168_v55 = vld [vmem:[%s3285_s6 + $0x78] sm:$0xff] }
  0x4c   : > { %2149 = vmatmul.mubr.msk.f32.gmra.mrb[4].mxu0 %vm826_vm2, %v825_v46  ;;  %v1164_v46 = vld [vmem:[%s3285_s6 + $0x58] sm:$0xff]  ;;  %v1029_v60 = vld [vmem:[%s3283_s4] sm:$0x3] }
  0x4d   : > { %924 = vmatprep.mubr.f32.mxu0 %v2693_v10  ;;  %949 = vmatpush1.msra.mxu0 %v810_v47  ;;  %v1135_v47 = vld [vmem:[%s3284_s5 + $0x70] sm:$0xff]  ;;  %v2427_v48 = vpack.c.bf16 %v1164_v46, %v1163_v45  ;;  %v1038_v63 = vrot.slane %v1029_v60, %v1037_v61 }
  0x4e   : > { %2440 = vmatprep.subr.bf16.mxu0 %v2439_v50  ;;  %2418 = vmatpush3.bf16.msra.mxu1 %v2415_v21  ;;  %v2469_v50 = vpack.c.bf16 %v1136_v49, %v1135_v47 }
  0x50   : > { %2150 = vmatmul.mubr.msk.f32.gmra.mrb[6].mxu0 %vm826_vm2, %v824_v44  ;;  %v2467_v44 = vpack.c.bf16 %v1152_v43, %v1151_v42 }
  0x51   : > { %1004 = vmatprep.mubr.f32.mxu0 %v2693_v10 }
  0x54   : > { %2151 = vmatmul.mubr.msk.f32.vlgmr.msra.gmra.mrb[0].mxu0 %vm931_vm3, %v795_v26  ;;  %v2459_v26 = vpack.c.bf16 %v1148_v25, %v1147_v24 }
  0x55   : > { %1010 = vmatprep.mubr.f32.mxu0 %v2693_v10  ;;  %2442 = vmatpush3.bf16.msra.mxu0 %v2441_v53  ;;  %v2431_v53 = vpack.c.bf16 %v1166_v52, %v1165_v51 }
  0x56   : > { %2444 = vmatprep.subr.bf16.mxu0 %v2443_v56  ;;  %v2435_v56 = vpack.c.bf16 %v1168_v55, %v1167_v54 }
  0x58   : > { %2152 = vmatmul.mubr.msk.f32.gmra.mrb[2].mxu0 %vm931_vm3, %v796_v29  ;;  %v1131_v29 = vld [vmem:[%s3284_s5 + $0x50] sm:$0xff] }
  0x59   : > { %1016 = vmatprep.mubr.f32.mxu0 %v2693_v10  ;;  %2446 = vmatpush3.bf16.msra.mxu0 %v2445_v59  ;;  %v2461_v32 = vpack.c.bf16 %v1132_v31, %v1131_v29  ;;  %v1033_v59 = vsub.s32 0, %v1032_v58 }
  0x5a   : > { %2448 = vmatprep.subr.bf16.mxu0 %v2447_v62 }
  0x5b   : > { %v1034_v62 = vrot.slane %v1029_v60, %v1033_v59 }
  0x5c   : > { %2153 = vmatmul.mubr.msk.f32.gmra.mrb[4].mxu0 %vm931_vm3, %v797_v30  ;;  %v2419_v30 = vpack.c.bf16 %v1160_v28, %v1159_v27 }
  0x5d   : > { %1022 = vmatprep.mubr.f32.mxu0 %v2693_v10  ;;  %2450 = vmatpush3.bf16.msra.mxu0 %v2449_v4 }
  0x5e   : > { %2452 = vmatprep.subr.bf16.mxu0 %v2451_v7  ;;  %2420 = vmatprep.subr.bf16.mxu1 %v2419_v30 }
  0x5f   : > { %2422 = vmatpush3.bf16.msra.mxu1 %v2419_v30 }
  0x60   : > { %2154 = vmatmul.mubr.msk.f32.gmra.mrb[6].mxu0 %vm931_vm3, %v801_v37  ;;  %v1162_v37 = vld [vmem:[%s3285_s6 + $0x48] sm:$0xff] }
  0x61   : > { %2454 = vmatpush3.bf16.msra.mxu0 %v2453_v14  ;;  %v2423_v39 = vpack.c.bf16 %v1162_v37, %v1161_v36 }
  0x62   : > { %2456 = vmatprep.subr.bf16.mxu0 %v2455_v17 }
  0x63   : > { %2424 = vmatprep.subr.bf16.mxu1 %v2423_v39 }
  0x64   : > { %2426 = vmatpush3.bf16.msra.mxu1 %v2423_v39 }
  0x65   : > { %2458 = vmatpush3.bf16.msra.mxu0 %v2457_v23  ;;  %2428 = vmatprep.subr.bf16.mxu1 %v2427_v48 }
  0x66   : > { %2460 = vmatprep.subr.bf16.mxu0 %v2459_v26 }
  0x68   : > { %2430 = vmatpush3.bf16.msra.mxu1 %v2427_v48 }
  0x69   : > { %2462 = vmatpush3.bf16.msra.mxu0 %v2461_v32  ;;  %2432 = vmatprep.subr.bf16.mxu1 %v2431_v53 }
  0x6a   : > { %2464 = vmatprep.subr.bf16.mxu0 %v2463_v35 }
  0x6c   : > { %2434 = vmatpush3.bf16.msra.mxu1 %v2431_v53 }
  0x6d   : > { %2466 = vmatpush3.bf16.msra.mxu0 %v2465_v41  ;;  %2436 = vmatprep.subr.bf16.mxu1 %v2435_v56 }
  0x6e   : > { %2468 = vmatprep.subr.bf16.mxu0 %v2467_v44 }
  0x70   : > { %2438 = vmatpush3.bf16.msra.mxu1 %v2435_v56 }
  0x71   : > { %2470 = vmatpush3.bf16.msra.mxu0 %v2469_v50 }
 0x127   : > { %v1006_v0 = vpop.f32.mrb[0].mxu0 }
 0x128   : > { %v3044_v1 = vadd.f32 %v1034_v62, %v1006_v0  ;;  %v1008_v2 = vpop.f32.mrb[1].mxu0 }
 0x129   : > { %v3046_v3 = vadd.f32 %v1038_v63, %v1008_v2 }
 0x12a   : > { %v1049_v4 = vmul.f32 %v3044_v1, %v3044_v1 }
 0x12b   : > { %v1050_v5 = vmul.f32 %v3046_v3, %v3046_v3  ;;  %v1012_v6 = vpop.f32.mrb[2].mxu0 }
 0x12c   : > { %v1057_v7 = vmul.f32 %v1049_v4, %v3044_v1  ;;  %v3053_v8 = vadd.f32 %v1034_v62, %v1012_v6  ;;  %v1014_v9 = vpop.f32.mrb[3].mxu0 }
 0x12d   : > { %v1058_v11 = vmul.f32 %v1050_v5, %v3046_v3  ;;  %v3056_v12 = vadd.f32 %v1038_v63, %v1014_v9 }
 0x12e   : > { %v1065_v13 = vmul.f32 0.044715, %v1057_v7  ;;  %v1051_v14 = vmul.f32 %v3053_v8, %v3053_v8 }
 0x12f   : > { %v1066_v15 = vmul.f32 0.044715, %v1058_v11  ;;  %v1052_v16 = vmul.f32 %v3056_v12, %v3056_v12  ;;  %v1018_v17 = vpop.f32.mrb[4].mxu0 }
 0x130   : > { %v1073_v18 = vadd.f32 %v1065_v13, %v3044_v1  ;;  %v1059_v19 = vmul.f32 %v1051_v14, %v3053_v8  ;;  %v3064_v20 = vadd.f32 %v1034_v62, %v1018_v17  ;;  %v1020_v21 = vpop.f32.mrb[5].mxu0 }
 0x131   : > { %v1074_v22 = vadd.f32 %v1066_v15, %v3046_v3  ;;  %v1060_v23 = vmul.f32 %v1052_v16, %v3056_v12  ;;  %v3068_v24 = vadd.f32 %v1038_v63, %v1020_v21 }
 0x132   : > { %v1081_v25 = vmul.f32 0.7978846, %v1073_v18  ;;  %v1067_v26 = vmul.f32 0.044715, %v1059_v19  ;;  %v1053_v27 = vmul.f32 %v3064_v20, %v3064_v20 }
 0x133   : > { %v1082_v28 = vmul.f32 0.7978846, %v1074_v22  ;;  %v1068_v29 = vmul.f32 0.044715, %v1060_v23  ;;  %v1054_v30 = vmul.f32 %v3068_v24, %v3068_v24  ;;  %v1024_v31 = vpop.f32.mrb[6].mxu0 }
 0x134   : > { %2597 = vtanh.f32 %v1081_v25  ;;  %v1075_v32 = vadd.f32 %v1067_v26, %v3053_v8  ;;  %v1061_v33 = vmul.f32 %v1053_v27, %v3064_v20  ;;  %v3076_v34 = vadd.f32 %v1034_v62, %v1024_v31  ;;  %v1026_v35 = vpop.f32.mrb[7].mxu0 }
 0x135   : > { %v1076_v36 = vadd.f32 %v1068_v29, %v3056_v12  ;;  %v1062_v37 = vmul.f32 %v1054_v30, %v3068_v24  ;;  %v3080_v38 = vadd.f32 %v1038_v63, %v1026_v35  ;;  %2599 = vtanh.f32 %v1082_v28 }
 0x136   : > { %v1083_v39 = vmul.f32 0.7978846, %v1075_v32  ;;  %v1069_v40 = vmul.f32 0.044715, %v1061_v33  ;;  %v1055_v41 = vmul.f32 %v3076_v34, %v3076_v34 }
 0x137   : > { %v1084_v42 = vmul.f32 0.7978846, %v1076_v36  ;;  %v1070_v43 = vmul.f32 0.044715, %v1062_v37  ;;  %v1056_v44 = vmul.f32 %v3080_v38, %v3080_v38  ;;  %v1410_v36 = vld [vmem:[%s3288_s9 + $0x8] sm:$0xff] }
 0x138   : > { %v1077_v45 = vadd.f32 %v1069_v40, %v3064_v20  ;;  %v1063_v46 = vmul.f32 %v1055_v41, %v3076_v34  ;;  %2601 = vtanh.f32 %v1083_v39  ;;  %v1412_v39 = vld [vmem:[%s3288_s9 + $0x18] sm:$0xff]  ;;  %v1413_v41 = vld [vmem:[%s3288_s9 + $0x20] sm:$0xff] }
 0x139   : > { %v1078_v47 = vadd.f32 %v1070_v43, %v3068_v24  ;;  %v1064_v48 = vmul.f32 %v1056_v44, %v3080_v38  ;;  %2603 = vtanh.f32 %v1084_v42  ;;  %v1414_v42 = vld [vmem:[%s3288_s9 + $0x28] sm:$0xff]  ;;  %v1415_v44 = vld [vmem:[%s3288_s9 + $0x30] sm:$0xff] }
 0x13a   : > { %v1085_v49 = vmul.f32 0.7978846, %v1077_v45  ;;  %v1071_v50 = vmul.f32 0.044715, %v1063_v46  ;;  %v2478_v43 = vpack.c.bf16 %v1414_v42, %v1413_v41  ;;  %v1416_v45 = vld [vmem:[%s3288_s9 + $0x38] sm:$0xff] }
 0x13b   : > { %v1086_v51 = vmul.f32 0.7978846, %v1078_v47  ;;  %v1072_v52 = vmul.f32 0.044715, %v1064_v48  ;;  %v2481_v46 = vpack.c.bf16 %v1416_v45, %v1415_v44 }
 0x13c   : > { %v1079_v53 = vadd.f32 %v1071_v50, %v3076_v34  ;;  %2605 = vtanh.f32 %v1085_v49 }
 0x13d   : > { %v1080_v54 = vadd.f32 %v1072_v52, %v3080_v38  ;;  %2607 = vtanh.f32 %v1086_v51 }
 0x13e   : > { %v2598_v55 = vpop.eup %2597  ;;  %v1087_v56 = vmul.f32 0.7978846, %v1079_v53 }
 0x13f   : > { %v2600_v58 = vpop.eup %2599  ;;  %v1097_v59 = vadd.f32 1.0, %v2598_v55  ;;  %v1088_v60 = vmul.f32 0.7978846, %v1080_v54  ;;  %v2155_v55 = vld [vmem:[%s3286_s7] ss:$0 sm:$0xff] }
 0x140   : > { %v1098_v61 = vadd.f32 1.0, %v2600_v58  ;;  %2609 = vtanh.f32 %v1087_v56 }
 0x141   : > { %v1105_v62 = vmul.f32 0.5, %v1097_v59  ;;  %2611 = vtanh.f32 %v1088_v60 }
 0x142   : > { %v2602_v63 = vpop.eup %2601  ;;  %v1106_v0 = vmul.f32 0.5, %v1098_v61 }
 0x143   : > { %v2604_v2 = vpop.eup %2603  ;;  %v1099_v4 = vadd.f32 1.0, %v2602_v63  ;;  %v1113_v7 = vmul.f32 %v1105_v62, %v3044_v1 }
 0x144   : > { %v1114_v5 = vmul.f32 %v1106_v0, %v3046_v3  ;;  %v1100_v6 = vadd.f32 1.0, %v2604_v2 }
 0x145   : > { %v1107_v9 = vmul.f32 0.5, %v1099_v4  ;;  %v1173_v19 = vrot.slane %v1113_v7, 1 }
 0x146   : > { %v2606_v11 = vpop.eup %2605  ;;  %1333 = vmatprep.mubr.f32.mxu0 %v1114_v5  ;;  %v1108_v13 = vmul.f32 0.5, %v1100_v6 }
 0x147   : > { %v2608_v14 = vpop.eup %2607  ;;  %1334 = vmatmul.mubr.f32.vlgmr.msra.gmra.mrb[8].mxu0 %v1113_v7  ;;  %v1115_v15 = vmul.f32 %v1107_v9, %v3053_v8  ;;  %v1101_v16 = vadd.f32 1.0, %v2606_v11 }
 0x148   : > { %v1116_v17 = vmul.f32 %v1108_v13, %v3056_v12  ;;  %v1102_v18 = vadd.f32 1.0, %v2608_v14 }
 0x149   : > { %v1174_v21 = vrot.slane %v1115_v15, 1  ;;  %v1109_v22 = vmul.f32 0.5, %v1101_v16 }
 0x14a   : > { %v2610_v23 = vpop.eup %2609  ;;  %1338 = vmatprep.mubr.f32.mxu0 %v1116_v17  ;;  %v1110_v3 = vmul.f32 0.5, %v1102_v18 }
 0x14b   : > { %v2612_v25 = vpop.eup %2611  ;;  %1339 = vmatmul.mubr.f32.gmra.mrb[10].mxu0 %v1115_v15  ;;  %v1175_v1 = vsel %vm818_vm1, %v1173_v19, %v1174_v21  ;;  %v1117_v26 = vmul.f32 %v1109_v22, %v3064_v20  ;;  %v1103_v27 = vadd.f32 1.0, %v2610_v23 }
 0x14c   : > { %2309 = vmatprep.mubr.f32.mxu1 %v1175_v1  ;;  %v1118_v8 = vmul.f32 %v1110_v3, %v3068_v24  ;;  %v1104_v28 = vadd.f32 1.0, %v2612_v25  ;;  %v1409_v24 = vld [vmem:[%s3288_s9] sm:$0xff] }
 0x14d   : > { %v1176_v29 = vrot.slane %v1117_v26, 1  ;;  %v1111_v12 = vmul.f32 0.5, %v1103_v27  ;;  %v2472_v37 = vpack.c.bf16 %v1410_v36, %v1409_v24 }
 0x14e   : > { %1343 = vmatprep.mubr.f32.mxu0 %v1118_v8  ;;  %v1112_v30 = vmul.f32 0.5, %v1104_v28 }
 0x14f   : > { %1344 = vmatmul.mubr.f32.gmra.mrb[12].mxu0 %v1117_v26  ;;  %v1177_v31 = vsel %vm818_vm1, %v1174_v21, %v1176_v29  ;;  %v1119_v32 = vmul.f32 %v1111_v12, %v3076_v34  ;;  %v2694_v34 = vmov 0.0|0.0  }
 0x150   : > { %2310 = vmatmul.mubr.f32.vlgmr.msra.gmra.mrb[0].mxu1 %v1177_v31  ;;  %v1120_v33 = vmul.f32 %v1112_v30, %v3080_v38  ;;  %2471 = vmatprep.subr.bf16.mxu1 %v2694_v34  ;;  %v1411_v38 = vld [vmem:[%s3288_s9 + $0x10] sm:$0xff] }
 0x151   : > { %v1178_v35 = vrot.slane %v1119_v32, 1  ;;  %2495 = vmatprep.subr.bf16.mxu0 %v2694_v34  ;;  %2473 = vmatpush3.bf16.msra.mxu1 %v2472_v37  ;;  %v2475_v40 = vpack.c.bf16 %v1412_v39, %v1411_v38  ;;  %v1401_v38 = vld [vmem:[%s3287_s8] sm:$0xff]  ;;  %v1402_v39 = vld [vmem:[%s3287_s8 + $0x8] sm:$0xff] }
 0x152   : > { %1348 = vmatprep.mubr.f32.mxu0 %v1120_v33  ;;  %2474 = vmatprep.subr.bf16.mxu1 %v2694_v34 }
 0x153   : > { %1349 = vmatmul.mubr.f32.gmra.mrb[14].mxu0 %v1119_v32  ;;  %v1179_v20 = vsel %vm818_vm1, %v1176_v29, %v1178_v35 }
 0x154   : > { %2312 = vmatprep.mubr.f32.mxu1 %v1179_v20  ;;  %2373 = vmatprep.mubr.msk.f32.mxu0 %vm2695_vm4, %v2693_v10 }
 0x155   : > { %2313 = vmatmul.mubr.f32.gmra.mrb[2].mxu1 %v1178_v35 }
 0x156   : > { %2476 = vmatpush3.bf16.msra.mxu1 %v2475_v40  ;;  %2331 = vmatprep.mubr.msk.f32.mxu1 %vm2695_vm4, %v2693_v10 }
 0x157   : > { %2477 = vmatprep.subr.bf16.mxu1 %v2694_v34 }
 0x15a   : > { %2479 = vmatpush3.bf16.msra.mxu1 %v2478_v43 }
 0x15b   : > { %2480 = vmatprep.subr.bf16.mxu1 %v2694_v34 }
 0x15e   : > { %2482 = vmatpush3.bf16.msra.mxu1 %v2481_v46  ;;  %v2484_v46 = vpack.c.bf16 %v1402_v39, %v1401_v38 }
 0x15f   : > { %2483 = vmatprep.subr.bf16.mxu1 %v2694_v34 }
 0x21a   : > { %v2229_v47 = vpop.f32.mrb[8].mxu0 }
 0x21b   : > { %v2230_v48 = vpop.f32.mrb[9].mxu0 }
 0x21c   : > { %v2231_v49 = vadd.f32 %v2230_v48, %v2229_v47  ;;  %v1403_v48 = vld [vmem:[%s3287_s8 + $0x10] sm:$0xff] }
 0x21e   : > { %v2232_v50 = vpop.f32.mrb[10].mxu0 }
 0x21f   : > { %v2233_v51 = vpop.f32.mrb[11].mxu0 }
 0x220   : > { %v2234_v52 = vadd.f32 %v2233_v51, %v2232_v50 }
 0x222   : > { %v2235_v53 = vpop.f32.mrb[12].mxu0 }
 0x223   : > { %v2311_v54 = vpop.f32.mrb[0].mxu1  ;;  %v2236_v56 = vpop.f32.mrb[13].mxu0 }
 0x224   : > { %v1341_v58 = vadd.f32 %v2311_v54, %v2234_v52  ;;  %v2237_v59 = vadd.f32 %v2236_v56, %v2235_v53  ;;  %v1250_v60 = vpop.f32.mrb[1].mxu1  ;;  %v1405_v56 = vld [vmem:[%s3287_s8 + $0x20] sm:$0xff] }
 0x225   : > { %v1336_v61 = vadd.f32 %v2231_v49, %v1250_v60  ;;  %v1404_v49 = vld [vmem:[%s3287_s8 + $0x18] sm:$0xff] }
 0x226   : > { %v1362_v62 = vadd.f32 %v2155_v55, %v1341_v58  ;;  %v2238_v63 = vpop.f32.mrb[14].mxu0  ;;  %v2487_v54 = vpack.c.bf16 %v1404_v49, %v1403_v48  ;;  %v1406_v58 = vld [vmem:[%s3287_s8 + $0x28] sm:$0xff] }
 0x227   : > { %v1361_v0 = vadd.f32 %v2155_v55, %v1336_v61  ;;  %v2239_v2 = vpop.f32.mrb[15].mxu0 }
 0x228   : > { %v1366_v4 = vmul.f32 %v1362_v62, %v1362_v62  ;;  %v2240_v5 = vadd.f32 %v2239_v2, %v2238_v63  ;;  %v2314_v6 = vpop.f32.mrb[2].mxu1  ;;  %v1408_v2 = vld [vmem:[%s3287_s8 + $0x38] sm:$0xff] }
 0x229   : > { %v1365_v7 = vmul.f32 %v1361_v0, %v1361_v0  ;;  %v1260_v9 = vpop.f32.mrb[3].mxu1 }
 0x22a   : > { %v1370_v11 = vmul.f32 %v1366_v4, %v1362_v62  ;;  %v1351_v13 = vadd.f32 %v2314_v6, %v2240_v5  ;;  %v1346_v14 = vadd.f32 %v2237_v59, %v1260_v9  ;;  %v1638_v5 = vld [vmem:[%s3290_s11] sm:$0xff]  ;;  %v1639_v6 = vld [vmem:[%s3290_s11 + $0x8] sm:$0xff]  ;;  %v1640_v9 = vld [vmem:[%s3290_s11 + $0x10] sm:$0xff] }
 0x22b   : > { %v1369_v15 = vmul.f32 %v1365_v7, %v1361_v0  ;;  %v2496_v7 = vpack.c.bf16 %v1639_v6, %v1638_v5 }
 0x22c   : > { %v1374_v16 = vmul.f32 0.044715, %v1370_v11  ;;  %v1364_v17 = vadd.f32 %v2155_v55, %v1351_v13  ;;  %v1363_v18 = vadd.f32 %v2155_v55, %v1346_v14  ;;  %v1641_v11 = vld [vmem:[%s3290_s11 + $0x18] sm:$0xff] }
 0x22d   : > { %v1373_v19 = vmul.f32 0.044715, %v1369_v15  ;;  %2497 = vmatpush3.bf16.msra.mxu0 %v2496_v7  ;;  %v2499_v13 = vpack.c.bf16 %v1641_v11, %v1640_v9 }
 0x22e   : > { %v1378_v21 = vadd.f32 %v1374_v16, %v1362_v62  ;;  %v1368_v22 = vmul.f32 %v1364_v17, %v1364_v17  ;;  %v1367_v23 = vmul.f32 %v1363_v18, %v1363_v18  ;;  %2498 = vmatprep.subr.bf16.mxu0 %v2694_v34 }
 0x22f   : > { %v1377_v3 = vadd.f32 %v1373_v19, %v1361_v0 }
 0x230   : > { %v1382_v25 = vmul.f32 0.7978846, %v1378_v21  ;;  %v1372_v1 = vmul.f32 %v1368_v22, %v1364_v17  ;;  %v1371_v26 = vmul.f32 %v1367_v23, %v1363_v18  ;;  %v2162_v22 = vld [vmem:[%s3289_s10] ss:$0 sm:$0xff] }
 0x231   : > { %v1381_v27 = vmul.f32 0.7978846, %v1377_v3  ;;  %2500 = vmatpush3.bf16.msra.mxu0 %v2499_v13 }
 0x232   : > { %2613 = vtanh.f32 %v1382_v25  ;;  %v1376_v8 = vmul.f32 0.044715, %v1372_v1  ;;  %v1375_v28 = vmul.f32 0.044715, %v1371_v26  ;;  %2501 = vmatprep.subr.bf16.mxu0 %v2694_v34 }
 0x233   : > { %2615 = vtanh.f32 %v1381_v27 }
 0x234   : > { %v1380_v29 = vadd.f32 %v1376_v8, %v1364_v17  ;;  %v1379_v12 = vadd.f32 %v1375_v28, %v1363_v18 }
 0x236   : > { %v1384_v30 = vmul.f32 0.7978846, %v1380_v29  ;;  %v1383_v31 = vmul.f32 0.7978846, %v1379_v12 }
 0x238   : > { %2617 = vtanh.f32 %v1384_v30 }
 0x239   : > { %2619 = vtanh.f32 %v1383_v31 }
 0x23c   : > { %v2614_v32 = vpop.eup %2613 }
 0x23d   : > { %v2616_v33 = vpop.eup %2615  ;;  %v1390_v35 = vadd.f32 1.0, %v2614_v32 }
 0x23e   : > { %v1389_v20 = vadd.f32 1.0, %v2616_v33 }
 0x23f   : > { %v1394_v24 = vmul.f32 0.5, %v1390_v35 }
 0x240   : > { %v1393_v36 = vmul.f32 0.5, %v1389_v20 }
 0x241   : > { %v1398_v37 = vmul.f32 %v1394_v24, %v1362_v62  ;;  %v2490_v62 = vpack.c.bf16 %v1406_v58, %v1405_v56 }
 0x242   : > { %v2618_v40 = vpop.eup %2617  ;;  %v1397_v41 = vmul.f32 %v1393_v36, %v1361_v0  ;;  %v1407_v0 = vld [vmem:[%s3287_s8 + $0x30] sm:$0xff] }
 0x243   : > { %v2620_v42 = vpop.eup %2619  ;;  %v1422_v43 = vrot.slane %v1398_v37, 1  ;;  %v1392_v44 = vadd.f32 1.0, %v2618_v40  ;;  %v2493_v4 = vpack.c.bf16 %v1408_v2, %v1407_v0 }
 0x244   : > { %v1421_v45 = vrot.slane %v1397_v41, 1  ;;  %v1391_v47 = vadd.f32 1.0, %v2620_v42 }
 0x245   : > { %v1396_v50 = vmul.f32 0.5, %v1392_v44 }
 0x246   : > { %v1423_v51 = vsel %vm818_vm1, %v1421_v45, %v1422_v43  ;;  %v1395_v52 = vmul.f32 0.5, %v1391_v47 }
 0x247   : > { %2332 = vmatmul.mubr.msk.f32.vlgmr.msra.gmra.mrb[4].mxu1 %vm1428_vm5, %v1423_v51  ;;  %v1400_v53 = vmul.f32 %v1396_v50, %v1364_v17 }
 0x248   : > { %2485 = vmatpush3.bf16.msra.mxu1 %v2484_v46  ;;  %2334 = vmatprep.mubr.msk.f32.mxu1 %vm2695_vm4, %v2693_v10  ;;  %v1399_v55 = vmul.f32 %v1395_v52, %v1363_v18 }
 0x249   : > { %2486 = vmatprep.subr.bf16.mxu1 %v2694_v34  ;;  %v1426_v59 = vrot.slane %v1400_v53, 1 }
 0x24a   : > { %v1424_v60 = vrot.slane %v1399_v55, 1 }
 0x24c   : > { %2488 = vmatpush3.bf16.msra.mxu1 %v2487_v54  ;;  %v1425_v61 = vsel %vm818_vm1, %v1422_v43, %v1424_v60  ;;  %v1427_v63 = vsel %vm818_vm1, %v1424_v60, %v1426_v59  ;;  %v2163_v60 = vld [vmem:[%s3291_s12] ss:$0 sm:$0xff] }
 0x24d   : > { %2335 = vmatmul.mubr.msk.f32.gmra.mrb[6].mxu1 %vm1428_vm5, %v1425_v61  ;;  %2489 = vmatprep.subr.bf16.mxu1 %v2694_v34 }
 0x24e   : > { %2337 = vmatprep.mubr.msk.f32.mxu1 %vm2695_vm4, %v2693_v10 }
 0x250   : > { %2491 = vmatpush3.bf16.msra.mxu1 %v2490_v62 }
 0x251   : > { %2338 = vmatmul.mubr.msk.f32.gmra.mrb[8].mxu1 %vm1428_vm5, %v1427_v63  ;;  %2492 = vmatprep.subr.bf16.mxu1 %v2694_v34 }
 0x252   : > { %2356 = vmatprep.mubr.msk.f32.mxu1 %vm2695_vm4, %v2693_v10 }
 0x254   : > { %2494 = vmatpush3.bf16.msra.mxu1 %v2493_v4 }
 0x255   : > { %2507 = vmatprep.subr.bf16.mxu1 %v2694_v34 }
 0x257   : > { %2357 = vmatmul.mubr.msk.f32.vlgmr.msra.gmra.mrb[10].mxu1 %vm1428_vm5, %v1397_v41 }
 0x258   : > { %2359 = vmatprep.mubr.msk.f32.mxu1 %vm2695_vm4, %v2693_v10 }
 0x25b   : > { %2360 = vmatmul.mubr.msk.f32.gmra.mrb[12].mxu1 %vm1428_vm5, %v1398_v37 }
 0x25c   : > { %2362 = vmatprep.mubr.msk.f32.mxu1 %vm2695_vm4, %v2693_v10 }
 0x25f   : > { %2363 = vmatmul.mubr.msk.f32.gmra.mrb[14].mxu1 %vm1428_vm5, %v1399_v55 }
 0x260   : > { %2393 = vmatprep.mubr.msk.f32.mxu1 %vm2695_vm4, %v2693_v10 }
 0x31a   : > { %v1501_v14 = vpop.f32.mrb[4].mxu1 }
 0x31b   : > { %v2333_v15 = vpop.f32.mrb[5].mxu1 }
 0x320   : > { %v1506_v16 = vpop.f32.mrb[6].mxu1 }
 0x321   : > { %v2336_v17 = vpop.f32.mrb[7].mxu1 }
 0x324   : > { %v1511_v18 = vpop.f32.mrb[8].mxu1 }
 0x325   : > { %v2339_v19 = vpop.f32.mrb[9].mxu1 }
 0x32a   : > { %v1587_v21 = vpop.f32.mrb[10].mxu1 }
 0x32b   : > { %v1588_v23 = vadd.f32 %v1587_v21, %v1501_v14  ;;  %v2358_v3 = vpop.f32.mrb[11].mxu1 }
 0x32d   : > { %v1608_v25 = vadd.f32 %v2162_v22, %v1588_v23 }
 0x32e   : > { %v1592_v1 = vpop.f32.mrb[12].mxu1 }
 0x32f   : > { %v1611_v26 = vmul.f32 %v1608_v25, %v1608_v25  ;;  %v1593_v27 = vadd.f32 %v1592_v1, %v1506_v16  ;;  %v2361_v8 = vpop.f32.mrb[13].mxu1 }
 0x330   : > { %v1800_v8 = vld [vmem:[%s3294_s15 + $0x8] sm:$0xff] }
 0x331   : > { %v1614_v28 = vmul.f32 %v1611_v26, %v1608_v25  ;;  %v1609_v29 = vadd.f32 %v2162_v22, %v1593_v27  ;;  %v1799_v27 = vld [vmem:[%s3294_s15] sm:$0xff] }
 0x332   : > { %v1597_v12 = vpop.f32.mrb[14].mxu1 }
 0x333   : > { %v1617_v30 = vmul.f32 0.044715, %v1614_v28  ;;  %v1612_v31 = vmul.f32 %v1609_v29, %v1609_v29  ;;  %v1598_v32 = vadd.f32 %v1597_v12, %v1511_v18  ;;  %v2364_v33 = vpop.f32.mrb[15].mxu1  ;;  %v2502_v28 = vpack.c.bf16 %v1800_v8, %v1799_v27  ;;  %v1802_v12 = vld [vmem:[%s3294_s15 + $0x18] sm:$0xff] }
 0x335   : > { %v1620_v35 = vadd.f32 %v1617_v30, %v1608_v25  ;;  %v1615_v20 = vmul.f32 %v1612_v31, %v1609_v29  ;;  %v1610_v24 = vadd.f32 %v2162_v22, %v1598_v32  ;;  %2509 = vmatpush3.bf16.msra.mxu1 %v2502_v28 }
 0x336   : > { %2508 = vmatprep.subr.bf16.mxu1 %v2694_v34 }
 0x337   : > { %v1623_v36 = vmul.f32 0.7978846, %v1620_v35  ;;  %v1618_v37 = vmul.f32 0.044715, %v1615_v20  ;;  %v1613_v38 = vmul.f32 %v1610_v24, %v1610_v24 }
 0x339   : > { %2621 = vtanh.f32 %v1623_v36  ;;  %v1621_v39 = vadd.f32 %v1618_v37, %v1609_v29  ;;  %v1616_v40 = vmul.f32 %v1613_v38, %v1610_v24 }
 0x33b   : > { %v1624_v41 = vmul.f32 0.7978846, %v1621_v39  ;;  %v1619_v42 = vmul.f32 0.044715, %v1616_v40  ;;  %v2167_v39 = vld [vmem:[%s3292_s13] ss:$0 sm:$0xff] }
 0x33d   : > { %2623 = vtanh.f32 %v1624_v41  ;;  %v1622_v43 = vadd.f32 %v1619_v42, %v1610_v24  ;;  %v2168_v41 = vld [vmem:[%s3293_s14] ss:$0 sm:$0xff] }
 0x33f   : > { %v1625_v44 = vmul.f32 0.7978846, %v1622_v43 }
 0x341   : > { %2625 = vtanh.f32 %v1625_v44 }
 0x343   : > { %v2622_v45 = vpop.eup %2621 }
 0x344   : > { %v1629_v46 = vadd.f32 1.0, %v2622_v45 }
 0x346   : > { %v1632_v47 = vmul.f32 0.5, %v1629_v46 }
 0x347   : > { %v2624_v48 = vpop.eup %2623 }
 0x348   : > { %v1635_v49 = vmul.f32 %v1632_v47, %v1608_v25  ;;  %v1630_v50 = vadd.f32 1.0, %v2624_v48 }
 0x34a   : > { %2374 = vmatmul.mubr.msk.f32.vlgmr.msra.gmra.mrb[16].mxu0 %vm1649_vm6, %v1635_v49  ;;  %v1633_v51 = vmul.f32 0.5, %v1630_v50 }
 0x34b   : > { %v2626_v52 = vpop.eup %2625  ;;  %2376 = vmatprep.mubr.msk.f32.mxu0 %vm2695_vm4, %v2693_v10  ;;  %2503 = vmatpush3.bf16.msra.mxu0 %v2502_v28 }
 0x34c   : > { %v1636_v53 = vmul.f32 %v1633_v51, %v1609_v29  ;;  %v1631_v54 = vadd.f32 1.0, %v2626_v52  ;;  %2504 = vmatprep.subr.bf16.mxu0 %v2694_v34  ;;  %v1801_v29 = vld [vmem:[%s3294_s15 + $0x10] sm:$0xff]  ;;  %v2169_v52 = vld [vmem:[%s3308_s30] ss:$0 sm:$0xff] }
 0x34d   : > { %v2505_v30 = vpack.c.bf16 %v1802_v12, %v1801_v29 }
 0x34e   : > { %2377 = vmatmul.mubr.msk.f32.gmra.mrb[18].mxu0 %vm1649_vm6, %v1636_v53  ;;  %v1634_v55 = vmul.f32 0.5, %v1631_v54 }
 0x34f   : > { %2379 = vmatprep.mubr.msk.f32.mxu0 %vm2695_vm4, %v2693_v10  ;;  %2510 = vmatpush3.bf16.msra.mxu1 %v2505_v30 }
 0x350   : > { %v1637_v56 = vmul.f32 %v1634_v55, %v1610_v24  ;;  %2506 = vmatpush3.bf16.msra.mxu0 %v2505_v30 }
 0x352   : > { %2380 = vmatmul.mubr.msk.f32.gmra.mrb[20].mxu0 %vm1649_vm6, %v1637_v56 }
 0x353   : > { %2390 = vmatprep.mubr.msk.f32.mxu0 %vm2695_vm4, %v2693_v10 }
 0x41d   : > { %v1725_v58 = vpop.f32.mrb[16].mxu0 }
 0x41e   : > { %v2375_v59 = vpop.f32.mrb[17].mxu0  ;;  %v1726_v0 = vadd.f32 %v2163_v60, %v1725_v58 }
 0x420   : > { %v1739_v7 = vsel %vm1649_vm6, %v1726_v0, 0.0 }
 0x421   : > { %v1730_v61 = vpop.f32.mrb[18].mxu0 }
 0x422   : > { %v1731_v62 = vadd.f32 %v2163_v60, %v1730_v61  ;;  %v2378_v63 = vpop.f32.mrb[19].mxu0 }
 0x424   : > { %v1742_v2 = vsel %vm1649_vm6, %v1731_v62, 0.0 }
 0x425   : > { %1743 = vadd.xlane.f32.xlu0 %v1742_v2  ;;  %v1735_v4 = vpop.f32.mrb[20].mxu0  ;;  %v1909_v2 = vand.u32 127, %v1031_v57 }
 0x426   : > { %v1736_v5 = vadd.f32 %v2163_v60, %v1735_v4  ;;  %v2381_v6 = vpop.f32.mrb[21].mxu0 }
 0x428   : > { %v1745_v9 = vsel %vm1649_vm6, %v1736_v5, 0.0 }
 0x429   : > { %1740 = vadd.xlane.f32.xlu0 %v1739_v7  ;;  %1746 = vadd.xlane.f32.xlu1 %v1745_v9 }
 0x4b2   : > { %v1744_v11 = vpop.xlane.xlu0 %1743 }
 0x4b3   : > { %v1750_v13 = vmul.f32 0.03125, %v1744_v11 }
 0x4b5   : > { %v1753_v14 = vsub.f32 %v1731_v62, %v1750_v13 }
 0x4b6   : > { %v1741_v15 = vpop.xlane.xlu0 %1740  ;;  %v1747_v16 = vpop.xlane.xlu1 %1746 }
 0x4b7   : > { %v1749_v17 = vmul.f32 0.03125, %v1741_v15  ;;  %v1751_v18 = vmul.f32 0.03125, %v1747_v16  ;;  %v1756_v19 = vmul.f32 %v1753_v14, %v1753_v14 }
 0x4b9   : > { %v1752_v21 = vsub.f32 %v1726_v0, %v1749_v17  ;;  %v1754_v22 = vsub.f32 %v1736_v5, %v1751_v18  ;;  %v1761_v23 = vsel %vm1649_vm6, %v1756_v19, 0.0 }
 0x4ba   : > { %1762 = vadd.xlane.f32.xlu1 %v1761_v23 }
 0x4bb   : > { %v1755_v3 = vmul.f32 %v1752_v21, %v1752_v21  ;;  %v1757_v25 = vmul.f32 %v1754_v22, %v1754_v22 }
 0x4bd   : > { %v1758_v1 = vsel %vm1649_vm6, %v1755_v3, 0.0  ;;  %v1764_v26 = vsel %vm1649_vm6, %v1757_v25, 0.0 }
 0x4be   : > { %1759 = vadd.xlane.f32.xlu0 %v1758_v1  ;;  %1765 = vadd.xlane.f32.xlu1 %v1764_v26 }
 0x547   : > { %v1763_v31 = vpop.xlane.xlu1 %1762 }
 0x548   : > { %v1768_v32 = vmul.f32 0.03125, %v1763_v31 }
 0x54a   : > { %v1771_v33 = vadd.f32 1e-05, %v1768_v32 }
 0x54b   : > { %v1760_v35 = vpop.xlane.xlu0 %1759  ;;  %v1766_v20 = vpop.xlane.xlu1 %1765 }
 0x54c   : > { %2627 = vrsqrt.f32 %v1771_v33  ;;  %v1767_v24 = vmul.f32 0.03125, %v1760_v35  ;;  %v1769_v36 = vmul.f32 0.03125, %v1766_v20 }
 0x54e   : > { %v1770_v34 = vadd.f32 1e-05, %v1767_v24  ;;  %v1772_v37 = vadd.f32 1e-05, %v1769_v36 }
 0x550   : > { %2629 = vrsqrt.f32 %v1770_v34 }
 0x551   : > { %2631 = vrsqrt.f32 %v1772_v37 }
 0x556   : > { %v2628_v38 = vpop.eup %2627 }
 0x557   : > { %v1777_v40 = vmul.f32 %v2628_v38, %v1753_v14 }
 0x559   : > { %v1787_v42 = vmul.f32 %v2167_v39, %v1777_v40 }
 0x55a   : > { %v2630_v43 = vpop.eup %2629 }
 0x55b   : > { %v2632_v44 = vpop.eup %2631  ;;  %v1797_v45 = vadd.f32 %v2168_v41, %v1787_v42  ;;  %v1776_v46 = vmul.f32 %v2630_v43, %v1752_v21 }
 0x55c   : > { %v1778_v47 = vmul.f32 %v2632_v44, %v1754_v22 }
 0x55d   : > { %v1786_v48 = vmul.f32 %v2167_v39, %v1776_v46  ;;  %2394 = vmatmul.mubr.msk.f32.vlgmr.msra.gmra.mrb[16].mxu1 %vm1649_vm6, %v1797_v45 }
 0x55e   : > { %2396 = vmatprep.mubr.msk.f32.mxu1 %vm2695_vm4, %v2693_v10  ;;  %v1788_v49 = vmul.f32 %v2167_v39, %v1778_v47 }
 0x55f   : > { %v1796_v50 = vadd.f32 %v2168_v41, %v1786_v48 }
 0x560   : > { %v1798_v51 = vadd.f32 %v2168_v41, %v1788_v49 }
 0x561   : > { %2391 = vmatmul.mubr.msk.f32.vlgmr.msra.gmra.mrb[22].mxu0 %vm1649_vm6, %v1796_v50 }
 0x562   : > { %2397 = vmatmul.mubr.msk.f32.gmra.mrb[18].mxu1 %vm1649_vm6, %v1798_v51 }
 0x630   : > { %v1890_v53 = vpop.f32.mrb[16].mxu1 }
 0x631   : > { %v1891_v54 = vadd.f32 %v2169_v52, %v1890_v53  ;;  %v2395_v55 = vpop.f32.mrb[17].mxu1 }
 0x633   : > { %v1902_v56 = vsel %vm1428_vm5, %v1891_v54, -inf }
 0x634   : > { %v1885_v58 = vpop.f32.mrb[22].mxu0  ;;  %1903 = vmax.xlane.f32.xlu1 %v1902_v56 }
 0x635   : > { %v1886_v59 = vadd.f32 %v2169_v52, %v1885_v58  ;;  %v1895_v10 = vpop.f32.mrb[18].mxu1  ;;  %v2392_v60 = vpop.f32.mrb[23].mxu0 }
 0x636   : > { %v2398_v61 = vpop.f32.mrb[19].mxu1  ;;  %v1896_v62 = vadd.f32 %v2169_v52, %v1895_v10 }
 0x637   : > { %v1899_v63 = vsel %vm1428_vm5, %v1886_v59, -inf }
 0x638   : > { %1900 = vmax.xlane.f32.xlu0 %v1899_v63  ;;  %v1905_v0 = vsel %vm1428_vm5, %v1896_v62, -inf }
 0x63c   : > { %1906 = vmax.xlane.f32.xlu0 %v1905_v0 }
 0x6c1   : > { %v1904_v4 = vpop.xlane.xlu1 %1903 }
 0x6c2   : > { %vm1911_vm7 = vcmp.eq.f32.partialorder %v1891_v54, %v1904_v4 }
 0x6c3   : > { %v1914_v5 = vsel %vm1911_vm7, %v1909_v2, 1073741824 }
 0x6c4   : > { %v1931_v6 = vsel %vm1428_vm5, %v1914_v5, 2147483647 }
 0x6c5   : > { %v1901_v7 = vpop.xlane.xlu0 %1900  ;;  %v1933_v9 = vshra.s32 %v1931_v6, 16  ;;  %v1932_v22 = vand.u32 65535, %v1931_v6 }
 0x6c6   : > { %vm1910_vm8 = vcmp.eq.f32.partialorder %v1886_v59, %v1901_v7 }
 0x6c7   : > { %v1913_v11 = vsel %vm1910_vm8, %v1909_v2, 1073741824  ;;  %v1935_v13 = vcvt.s32.f32 %v1933_v9  ;;  %v1934_v3 = vcvt.s32.f32 %v1932_v22 }
 0x6c8   : > { %v1916_v14 = vsel %vm1428_vm5, %v1913_v11, 2147483647 }
 0x6c9   : > { %1936 = vmin.xlane.f32.xlu0 %v1935_v13  ;;  %v1907_v15 = vpop.xlane.xlu0 %1906  ;;  %v1918_v16 = vshra.s32 %v1916_v14, 16  ;;  %v1917_v25 = vand.u32 65535, %v1916_v14 }
 0x6ca   : > { %vm1912_vm9 = vcmp.eq.f32.partialorder %v1896_v62, %v1907_v15 }
 0x6cb   : > { %v1915_v17 = vsel %vm1912_vm9, %v1909_v2, 1073741824  ;;  %v1920_v18 = vcvt.s32.f32 %v1918_v16  ;;  %v1919_v27 = vcvt.s32.f32 %v1917_v25 }
 0x6cc   : > { %v1946_v57 = vsel %vm1428_vm5, %v1915_v17, 2147483647 }
 0x6cd   : > { %1921 = vmin.xlane.f32.xlu1 %v1920_v18  ;;  %v1948_v19 = vshra.s32 %v1946_v57, 16  ;;  %v1947_v8 = vand.u32 65535, %v1946_v57 }
 0x6cf   : > { %v1950_v21 = vcvt.s32.f32 %v1948_v19  ;;  %v1949_v12 = vcvt.s32.f32 %v1947_v8 }
 0x6d1   : > { %1951 = vmin.xlane.f32.xlu1 %v1950_v21 }
 0x756   : > { %v1937_v23 = vpop.xlane.xlu0 %1936 }
 0x757   : > { %vm1938_vm10 = vcmp.eq.f32.partialorder %v1935_v13, %v1937_v23  ;;  %v1943_v31 = vcvt.f32.s32 %v1937_v23 }
 0x758   : > { %v1939_v1 = vsel %vm1938_vm10, %v1934_v3, inf }
 0x759   : > { %1940 = vmin.xlane.f32.xlu1 %v1939_v1  ;;  %v1944_v33 = vshll.u32 %v1943_v31, 16 }
 0x75a   : > { %v1922_v26 = vpop.xlane.xlu1 %1921 }
 0x75b   : > { %vm1923_vm11 = vcmp.eq.f32.partialorder %v1920_v18, %v1922_v26  ;;  %v1928_v35 = vcvt.f32.s32 %v1922_v26 }
 0x75c   : > { %v1924_v28 = vsel %vm1923_vm11, %v1919_v27, inf }
 0x75d   : > { %1925 = vmin.xlane.f32.xlu0 %v1924_v28  ;;  %v1929_v34 = vshll.u32 %v1928_v35, 16 }
 0x75e   : > { %v1952_v29 = vpop.xlane.xlu1 %1951 }
 0x75f   : > { %vm1953_vm12 = vcmp.eq.f32.partialorder %v1950_v21, %v1952_v29  ;;  %v1958_v37 = vcvt.f32.s32 %v1952_v29 }
 0x760   : > { %v1954_v30 = vsel %vm1953_vm12, %v1949_v12, inf }
 0x761   : > { %1955 = vmin.xlane.f32.xlu0 %v1954_v30  ;;  %v1959_v41 = vshll.u32 %v1958_v37, 16 }
 0x7e6   : > { %v1941_v32 = vpop.xlane.xlu1 %1940 }
 0x7e7   : > { %v1942_v20 = vcvt.f32.s32 %v1941_v32 }
 0x7e9   : > { %v1945_v24 = vadd.s32 %v1944_v33, %v1942_v20 }
 0x7ea   : > { %v1926_v36 = vpop.xlane.xlu0 %1925 }
 0x7eb   : > { %1963 = vst.msk [vmem:[%s784_s23 + $0x8] sm:$0xff] %vm1961_vm13, %v1945_v24  ;;  %v1927_v38 = vcvt.f32.s32 %v1926_v36 }
 0x7ed   : > { %v1930_v39 = vadd.s32 %v1929_v34, %v1927_v38 }
 0x7ee   : > { %v1956_v40 = vpop.xlane.xlu0 %1955 }
 0x7ef   : > { %1962 = vst.msk [vmem:[%s784_s23] sm:$0xff] %vm1961_vm13, %v1930_v39  ;;  %v1957_v42 = vcvt.f32.s32 %v1956_v40 }
 0x7f1   : > { %v1960_v43 = vadd.s32 %v1959_v41, %v1957_v42 }
 0x7f3   : > { %1964 = vst.msk [vmem:[%s784_s23 + $0x10] sm:$0xff] %vm1961_vm13, %v1960_v43 }
 0x7f4 PF: > { %s27_s28 = sadd.s32 1, %s2687_s28   ;;  %s3311_s16 = sld [smem:[#allocation5_spill]] }
 0x7f5   : > { %p24_p11 = scmp.ge.s32.totalorder %s27_s28, 4   ;;  %s3312_s24 = smov %s2675_s25 }
 0x7f6   : > { %s3313_s25 = smov %s2825_s19  ;;  %s3314_s26 = smov %s2683_s27 }
 0x7f7   :  { %26 = sbr.rel (!%p24_p11) target bundleno = 8 (0x8), region = 251 }
 0x7fa   : > { %s3315_s27 = smov %s3311_s16 }

</bundles_post_ra>
